<compile_context>
chip_gen: v5e
topology: v5e:2x2
jax: 0.10.0
libtpu: 0.0.40
codegen_flags: <defaults>
</compile_context>

<pallas_src>
import jax
import jax.numpy as jnp
from jax.experimental import pallas as pl
from jax.experimental.pallas import tpu as pltpu

# ----------------------------- configuration --------------------------------
B = 2          # batch
T = 8          # maxlen (sequence length)
D = 32         # hidden_units
H = 2          # num_heads
HD = D // H    # head dim
L = 2          # num_blocks
ITEM_NUM = 50  # item vocabulary (item_num); table size = item_num + 2
EPS = 1e-8     # LayerNorm eps (matches torch.nn.LayerNorm(eps=1e-8))
NEG_INF = -1e30


# ------------------------------ Pallas kernel --------------------------------
def _layernorm2d(x, g, b):
    mu = jnp.mean(x, axis=-1, keepdims=True)
    var = jnp.mean((x - mu) ** 2, axis=-1, keepdims=True)
    return (x - mu) * jax.lax.rsqrt(var + EPS) * g + b


def sasrec_kernel(seqs_ref, tl_ref, amask_ref, pn_ref,
                  ln1_g_ref, ln1_b_ref,
                  wq_ref, bq_ref, wk_ref, bk_ref, wv_ref, bv_ref,
                  wo_ref, bo_ref,
                  ln2_g_ref, ln2_b_ref,
                  w1_ref, b1_ref, w2_ref, b2_ref,
                  lnf_g_ref, lnf_b_ref,
                  out_ref):
    tl = tl_ref[0]                                   # (T, 1)
    x = seqs_ref[0] * tl                             # (T, D) timeline-masked
    amask = amask_ref[...]                           # (T, T) causal mask

    for l in range(L):                               # static unroll over blocks
        # ---- causal multi-head self-attention (Q = LN(x); K = V = x) ----
        q_ln = _layernorm2d(x, ln1_g_ref[l], ln1_b_ref[l])
        # 1/sqrt(HD) scale is pre-folded into wq/bq by the wrapper
        q = jnp.dot(q_ln, wq_ref[l], preferred_element_type=jnp.float32) + bq_ref[l]
        k = jnp.dot(x,    wk_ref[l], preferred_element_type=jnp.float32) + bk_ref[l]
        v = jnp.dot(x,    wv_ref[l], preferred_element_type=jnp.float32) + bv_ref[l]

        qh = q.reshape(T, H, HD)
        kh = k.reshape(T, H, HD)
        vh = v.reshape(T, H, HD)
        s = jnp.einsum('qhd,khd->hqk', qh, kh,
                       preferred_element_type=jnp.float32)      # (H, T, T)
        s = s + amask[None]
        s = s - jnp.max(s, axis=-1, keepdims=True)
        p = jnp.exp(s)
        p = p * pl.reciprocal(jnp.sum(p, axis=-1, keepdims=True), approx=True)
        attn = jnp.einsum('hqk,khd->qhd', p, vh,
                          preferred_element_type=jnp.float32).reshape(T, D)
        mha = jnp.dot(attn, wo_ref[l], preferred_element_type=jnp.float32) + bo_ref[l]
        x = q_ln + mha                               # residual on LN'ed Q

        # ---- point-wise feed-forward (1x1 convs == dense per position) ----
        x_ln = _layernorm2d(x, ln2_g_ref[l], ln2_b_ref[l])
        h1 = jnp.dot(x_ln, w1_ref[l], preferred_element_type=jnp.float32) + b1_ref[l]
        h1 = jnp.maximum(h1, 0.0)
        h2 = jnp.dot(h1, w2_ref[l], preferred_element_type=jnp.float32) + b2_ref[l]
        x = (h2 + x_ln) * tl                         # residual + timeline mask

    feats = _layernorm2d(x, lnf_g_ref[0], lnf_b_ref[0])          # (T, D)
    pn = pn_ref[0]                                               # (2, T, D)
    logits = jnp.sum(feats[None] * pn, axis=-1)                  # (2, T)
    out_ref[...] = logits[None]                                  # one store


def _full_spec(shape):
    return pl.BlockSpec(shape, lambda b: (0,) * len(shape))


def sasrec_forward(params, log_seqs, pos_seqs, neg_seqs):
    (item_emb, pos_emb_table,
     ln1_g, ln1_b, in_w, in_b, out_w, out_b,
     ln2_g, ln2_b, c1_w, c1_b, c2_w, c2_b,
     lnf_g, lnf_b) = params
    f32 = jnp.float32

    # ---- glue: embedding gathers / masks (plain JAX) ----
    seqs = item_emb[log_seqs] * (D ** 0.5)
    seqs = seqs + pos_emb_table[jnp.arange(T)][None, :, :]
    tl = (log_seqs != 0).astype(f32)[..., None]                        # (B, T, 1)
    idx = jnp.arange(T)
    amask = jnp.where(idx[None, :] > idx[:, None], NEG_INF, 0.0).astype(f32)
    pn_e = jnp.stack([item_emb[pos_seqs], item_emb[neg_seqs]], axis=1)  # (B,2,T,D)

    # ---- pre-transpose torch (out,in) weights to (in,out); fold attn scale ----
    scale = 1.0 / (HD ** 0.5)
    wq = jnp.swapaxes(in_w[:, :D, :], 1, 2) * scale          # (L, D, D)
    bq = in_b[:, :D] * scale                                 # (L, D)
    wk = jnp.swapaxes(in_w[:, D:2 * D, :], 1, 2)
    bk = in_b[:, D:2 * D]
    wv = jnp.swapaxes(in_w[:, 2 * D:, :], 1, 2)
    bv = in_b[:, 2 * D:]
    wo = jnp.swapaxes(out_w, 1, 2)
    w1 = jnp.swapaxes(c1_w, 1, 2)
    w2 = jnp.swapaxes(c2_w, 1, 2)

    inputs = (seqs.astype(f32), tl, amask, pn_e.astype(f32),
              ln1_g, ln1_b, wq, bq, wk, bk, wv, bv, wo, out_b,
              ln2_g, ln2_b, w1, c1_b, w2, c2_b,
              lnf_g, lnf_b)

    in_specs = [
        pl.BlockSpec((1, T, D), lambda b: (b, 0, 0)),          # seqs
        pl.BlockSpec((1, T, 1), lambda b: (b, 0, 0)),          # timeline mask
        pl.BlockSpec((T, T), lambda b: (0, 0)),                # causal mask
        pl.BlockSpec((1, 2, T, D), lambda b: (b, 0, 0, 0)),    # pos|neg embs
    ] + [_full_spec(x.shape) for x in inputs[4:]]              # full weights

    out = pl.pallas_call(
        sasrec_kernel,
        out_shape=jax.ShapeDtypeStruct((B, 2, T), f32),
        grid=(B,),
        in_specs=in_specs,
        out_specs=pl.BlockSpec((1, 2, T), lambda b: (b, 0, 0)),
        compiler_params=pltpu.CompilerParams(
            dimension_semantics=("parallel",)),
    )(*inputs)
    return out[:, 0, :], out[:, 1, :]


# ------------------------ plain-JAX reference (torch layout) -----------------
def sasrec_reference(params, log_seqs, pos_seqs, neg_seqs):
    """Straight jnp port of the PyTorch forward: torch weight layouts, per-head
    loop, exact softmax.  Structurally independent from the kernel math."""
    (item_emb, pos_emb_table,
     ln1_g, ln1_b, in_w, in_b, out_w, out_b,
     ln2_g, ln2_b, c1_w, c1_b, c2_w, c2_b,
     lnf_g, lnf_b) = params

    def ln(x, g, b):
        mu = jnp.mean(x, axis=-1, keepdims=True)
        var = jnp.mean((x - mu) ** 2, axis=-1, keepdims=True)
        return (x - mu) / jnp.sqrt(var + EPS) * g + b

    seqs = item_emb[log_seqs] * (D ** 0.5) + pos_emb_table[jnp.arange(T)][None]
    tl = (log_seqs != 0).astype(jnp.float32)[..., None]
    idx = jnp.arange(T)
    amask = jnp.where(idx[None, :] > idx[:, None], NEG_INF, 0.0).astype(jnp.float32)
    scale = 1.0 / (HD ** 0.5)

    x = seqs * tl
    for l in range(L):
        q_ln = ln(x, ln1_g[l], ln1_b[l])
        q = q_ln @ in_w[l, :D].T + in_b[l, :D]
        k = x @ in_w[l, D:2 * D].T + in_b[l, D:2 * D]
        v = x @ in_w[l, 2 * D:].T + in_b[l, 2 * D:]
        heads = []
        for h in range(H):
            qh = q[..., h * HD:(h + 1) * HD]
            kh = k[..., h * HD:(h + 1) * HD]
            vh = v[..., h * HD:(h + 1) * HD]
            s = jnp.einsum('bqd,bkd->bqk', qh, kh) * scale + amask[None]
            p = jax.nn.softmax(s, axis=-1)
            heads.append(jnp.einsum('bqk,bkd->bqd', p, vh))
        attn = jnp.concatenate(heads, axis=-1)
        mha = attn @ out_w[l].T + out_b[l]
        x = q_ln + mha
        x_ln = ln(x, ln2_g[l], ln2_b[l])
        h1 = jnp.maximum(x_ln @ c1_w[l].T + c1_b[l], 0.0)
        h2 = h1 @ c2_w[l].T + c2_b[l]
        x = (h2 + x_ln) * tl
    feats = ln(x, lnf_g[0], lnf_b[0])
    pos_logits = jnp.sum(feats * item_emb[pos_seqs], axis=-1)
    neg_logits = jnp.sum(feats * item_emb[neg_seqs], axis=-1)
    return pos_logits, neg_logits


# ------------------------------ parameter init -------------------------------
def init_params(key):
    ks = jax.random.split(key, 16)
    f32 = jnp.float32

    item_emb = (jax.random.normal(ks[0], (ITEM_NUM + 2, D)) * 0.5).astype(f32)
    item_emb = item_emb.at[0].set(0.0)                      # padding_idx=0
    pos_emb_table = (jax.random.normal(ks[1], (T, D)) * 0.5).astype(f32)

    ln1_g = jnp.ones((L, D), f32); ln1_b = jnp.zeros((L, D), f32)
    ln2_g = jnp.ones((L, D), f32); ln2_b = jnp.zeros((L, D), f32)
    lnf_g = jnp.ones((1, D), f32); lnf_b = jnp.zeros((1, D), f32)

    in_w = (jax.random.normal(ks[2], (L, 3 * D, D)) * 0.1).astype(f32)
    in_b = jnp.zeros((L, 3 * D), f32)
    out_w = (jax.random.normal(ks[3], (L, D, D)) * 0.1).astype(f32)
    out_b = jnp.zeros((L, D), f32)

    c1_w = (jax.random.normal(ks[4], (L, D, D)) * 0.1).astype(f32)
    c1_b = (jax.random.normal(ks[5], (L, D)) * 0.05).astype(f32)
    c2_w = (jax.random.normal(ks[6], (L, D, D)) * 0.1).astype(f32)
    c2_b = (jax.random.normal(ks[7], (L, D)) * 0.05).astype(f32)

    return (item_emb, pos_emb_table,
            ln1_g, ln1_b, in_w, in_b, out_w, out_b,
            ln2_g, ln2_b, c1_w, c1_b, c2_w, c2_b,
            lnf_g, lnf_b)


# ------------------------------------ main -----------------------------------
if __name__ == "__main__":
    key = jax.random.PRNGKey(0)
    kp, kd1, kd2, kd3 = jax.random.split(key, 4)
    params = init_params(kp)

    log_seqs = jax.random.randint(kd1, (B, T), 0, ITEM_NUM + 2, dtype=jnp.int32)
    log_seqs = log_seqs.at[:, :2].set(0)                     # leading padding
    pos_seqs = jax.random.randint(kd2, (B, T), 1, ITEM_NUM + 1, dtype=jnp.int32)
    neg_seqs = jax.random.randint(kd3, (B, T), 1, ITEM_NUM + 1, dtype=jnp.int32)

    pos_logits, neg_logits = sasrec_forward(params, log_seqs, pos_seqs, neg_seqs)
    pos_logits = jax.block_until_ready(pos_logits)
    neg_logits = jax.block_until_ready(neg_logits)

    ref_pos, ref_neg = sasrec_reference(params, log_seqs, pos_seqs, neg_seqs)
    assert pos_logits.shape == (B, T) and neg_logits.shape == (B, T)
    assert jnp.allclose(pos_logits, ref_pos, rtol=5e-3, atol=5e-3)
    assert jnp.allclose(neg_logits, ref_neg, rtol=5e-3, atol=5e-3)

    print("KERNEL_OK")
</pallas_src>

<mosaic_0001>
module attributes {stable_mosaic.version = 11 : i64} {
  func.func @sasrec_kernel(%arg0: i32, %arg1: memref<1x8x32xf32, #tpu.memory_space<vmem>>, %arg2: memref<1x8x1xf32, #tpu.memory_space<vmem>>, %arg3: memref<8x8xf32, #tpu.memory_space<vmem>>, %arg4: memref<1x2x8x32xf32, #tpu.memory_space<vmem>>, %arg5: memref<2x32xf32, #tpu.memory_space<vmem>>, %arg6: memref<2x32xf32, #tpu.memory_space<vmem>>, %arg7: memref<2x32x32xf32, #tpu.memory_space<vmem>>, %arg8: memref<2x32xf32, #tpu.memory_space<vmem>>, %arg9: memref<2x32x32xf32, #tpu.memory_space<vmem>>, %arg10: memref<2x32xf32, #tpu.memory_space<vmem>>, %arg11: memref<2x32x32xf32, #tpu.memory_space<vmem>>, %arg12: memref<2x32xf32, #tpu.memory_space<vmem>>, %arg13: memref<2x32x32xf32, #tpu.memory_space<vmem>>, %arg14: memref<2x32xf32, #tpu.memory_space<vmem>>, %arg15: memref<2x32xf32, #tpu.memory_space<vmem>>, %arg16: memref<2x32xf32, #tpu.memory_space<vmem>>, %arg17: memref<2x32x32xf32, #tpu.memory_space<vmem>>, %arg18: memref<2x32xf32, #tpu.memory_space<vmem>>, %arg19: memref<2x32x32xf32, #tpu.memory_space<vmem>>, %arg20: memref<2x32xf32, #tpu.memory_space<vmem>>, %arg21: memref<1x32xf32, #tpu.memory_space<vmem>>, %arg22: memref<1x32xf32, #tpu.memory_space<vmem>>, %arg23: memref<1x2x8xf32, #tpu.memory_space<vmem>>) attributes {dimension_semantics = [#tpu.dimension_semantics<parallel>], iteration_bounds = array<i64: 2>, scalar_prefetch = 0 : i64, scratch_operands = 0 : i64, tpu.core_type = #tpu.core_type<tc>, window_params = [{transform_indices = @transform_0, window_bounds = array<i64: 1, 8, 32>}, {transform_indices = @transform_1, window_bounds = array<i64: 1, 8, 1>}, {pipeline_mode = #tpu.pipeline_mode<synchronous>, transform_indices = @transform_2, window_bounds = array<i64: 8, 8>}, {transform_indices = @transform_3, window_bounds = array<i64: 1, 2, 8, 32>}, {pipeline_mode = #tpu.pipeline_mode<synchronous>, transform_indices = @transform_4, window_bounds = array<i64: 2, 32>}, {pipeline_mode = #tpu.pipeline_mode<synchronous>, transform_indices = @transform_5, window_bounds = array<i64: 2, 32>}, {pipeline_mode = #tpu.pipeline_mode<synchronous>, transform_indices = @transform_6, window_bounds = array<i64: 2, 32, 32>}, {pipeline_mode = #tpu.pipeline_mode<synchronous>, transform_indices = @transform_7, window_bounds = array<i64: 2, 32>}, {pipeline_mode = #tpu.pipeline_mode<synchronous>, transform_indices = @transform_8, window_bounds = array<i64: 2, 32, 32>}, {pipeline_mode = #tpu.pipeline_mode<synchronous>, transform_indices = @transform_9, window_bounds = array<i64: 2, 32>}, {pipeline_mode = #tpu.pipeline_mode<synchronous>, transform_indices = @transform_10, window_bounds = array<i64: 2, 32, 32>}, {pipeline_mode = #tpu.pipeline_mode<synchronous>, transform_indices = @transform_11, window_bounds = array<i64: 2, 32>}, {pipeline_mode = #tpu.pipeline_mode<synchronous>, transform_indices = @transform_12, window_bounds = array<i64: 2, 32, 32>}, {pipeline_mode = #tpu.pipeline_mode<synchronous>, transform_indices = @transform_13, window_bounds = array<i64: 2, 32>}, {pipeline_mode = #tpu.pipeline_mode<synchronous>, transform_indices = @transform_14, window_bounds = array<i64: 2, 32>}, {pipeline_mode = #tpu.pipeline_mode<synchronous>, transform_indices = @transform_15, window_bounds = array<i64: 2, 32>}, {pipeline_mode = #tpu.pipeline_mode<synchronous>, transform_indices = @transform_16, window_bounds = array<i64: 2, 32, 32>}, {pipeline_mode = #tpu.pipeline_mode<synchronous>, transform_indices = @transform_17, window_bounds = array<i64: 2, 32>}, {pipeline_mode = #tpu.pipeline_mode<synchronous>, transform_indices = @transform_18, window_bounds = array<i64: 2, 32, 32>}, {pipeline_mode = #tpu.pipeline_mode<synchronous>, transform_indices = @transform_19, window_bounds = array<i64: 2, 32>}, {pipeline_mode = #tpu.pipeline_mode<synchronous>, transform_indices = @transform_20, window_bounds = array<i64: 1, 32>}, {pipeline_mode = #tpu.pipeline_mode<synchronous>, transform_indices = @transform_21, window_bounds = array<i64: 1, 32>}, {transform_indices = @transform_22, window_bounds = array<i64: 1, 2, 8>}]} {
    %c0 = arith.constant 0 : index
    %c0_0 = arith.constant 0 : index
    %c0_1 = arith.constant 0 : index
    %0 = vector.load %arg2[%c0, %c0_0, %c0_1] : memref<1x8x1xf32, #tpu.memory_space<vmem>>, vector<1x8x1xf32>
    %1 = vector.shape_cast %0 : vector<1x8x1xf32> to vector<8x1xf32>
    %c0_2 = arith.constant 0 : index
    %c0_3 = arith.constant 0 : index
    %c0_4 = arith.constant 0 : index
    %2 = vector.load %arg1[%c0_2, %c0_3, %c0_4] : memref<1x8x32xf32, #tpu.memory_space<vmem>>, vector<1x8x32xf32>
    %3 = vector.shape_cast %2 : vector<1x8x32xf32> to vector<8x32xf32>
    %4 = vector.broadcast %1 : vector<8x1xf32> to vector<8x32xf32>
    %5 = arith.mulf %3, %4 : vector<8x32xf32>
    %c0_5 = arith.constant 0 : index
    %c0_6 = arith.constant 0 : index
    %6 = vector.load %arg3[%c0_5, %c0_6] : memref<8x8xf32, #tpu.memory_space<vmem>>, vector<8x8xf32>
    %c0_7 = arith.constant 0 : index
    %c0_8 = arith.constant 0 : index
    %7 = vector.load %arg5[%c0_7, %c0_8] : memref<2x32xf32, #tpu.memory_space<vmem>>, vector<1x32xf32>
    %8 = vector.shape_cast %7 : vector<1x32xf32> to vector<32xf32>
    %c0_9 = arith.constant 0 : index
    %c0_10 = arith.constant 0 : index
    %9 = vector.load %arg6[%c0_9, %c0_10] : memref<2x32xf32, #tpu.memory_space<vmem>>, vector<1x32xf32>
    %10 = vector.shape_cast %9 : vector<1x32xf32> to vector<32xf32>
    %cst = arith.constant dense<0.000000e+00> : vector<8xf32>
    %11 = vector.multi_reduction <add>, %5, %cst [1] : vector<8x32xf32> to vector<8xf32>
    %12 = vector.shape_cast %11 : vector<8xf32> to vector<8x1xf32>
    %cst_11 = arith.constant 3.200000e+01 : f32
    %13 = vector.broadcast %cst_11 : f32 to vector<8x1xf32>
    %14 = arith.divf %12, %13 : vector<8x1xf32>
    %15 = vector.broadcast %14 : vector<8x1xf32> to vector<8x32xf32>
    %16 = arith.subf %5, %15 : vector<8x32xf32>
    %17 = arith.mulf %16, %16 : vector<8x32xf32>
    %cst_12 = arith.constant dense<0.000000e+00> : vector<8xf32>
    %18 = vector.multi_reduction <add>, %17, %cst_12 [1] : vector<8x32xf32> to vector<8xf32>
    %19 = vector.shape_cast %18 : vector<8xf32> to vector<8x1xf32>
    %cst_13 = arith.constant 3.200000e+01 : f32
    %20 = vector.broadcast %cst_13 : f32 to vector<8x1xf32>
    %21 = arith.divf %19, %20 : vector<8x1xf32>
    %22 = vector.broadcast %14 : vector<8x1xf32> to vector<8x32xf32>
    %23 = arith.subf %5, %22 : vector<8x32xf32>
    %cst_14 = arith.constant 9.99999993E-9 : f32
    %24 = vector.broadcast %cst_14 : f32 to vector<8x1xf32>
    %25 = arith.addf %21, %24 : vector<8x1xf32>
    %26 = math.rsqrt %25 : vector<8x1xf32>
    %27 = vector.broadcast %26 : vector<8x1xf32> to vector<8x32xf32>
    %28 = arith.mulf %23, %27 : vector<8x32xf32>
    %29 = vector.shape_cast %8 : vector<32xf32> to vector<1x32xf32>
    %30 = vector.broadcast %29 : vector<1x32xf32> to vector<8x32xf32>
    %31 = arith.mulf %28, %30 : vector<8x32xf32>
    %32 = vector.shape_cast %10 : vector<32xf32> to vector<1x32xf32>
    %33 = vector.broadcast %32 : vector<1x32xf32> to vector<8x32xf32>
    %34 = arith.addf %31, %33 : vector<8x32xf32>
    %c0_15 = arith.constant 0 : index
    %c0_16 = arith.constant 0 : index
    %c0_17 = arith.constant 0 : index
    %35 = vector.load %arg7[%c0_15, %c0_16, %c0_17] : memref<2x32x32xf32, #tpu.memory_space<vmem>>, vector<1x32x32xf32>
    %36 = vector.shape_cast %35 : vector<1x32x32xf32> to vector<32x32xf32>
    %cst_18 = arith.constant dense<0.000000e+00> : vector<8x32xf32>
    %37 = tpu.matmul %34, %36, %cst_18 {dimension_numbers = #tpu.dot_dimension_numbers<[1], [0], [0], [1], [0, 0, 1, 1], [], []>} : vector<8x32xf32>, vector<32x32xf32>, vector<8x32xf32> -> vector<8x32xf32>
    %c0_19 = arith.constant 0 : index
    %c0_20 = arith.constant 0 : index
    %38 = vector.load %arg8[%c0_19, %c0_20] : memref<2x32xf32, #tpu.memory_space<vmem>>, vector<1x32xf32>
    %39 = vector.shape_cast %38 : vector<1x32xf32> to vector<32xf32>
    %40 = vector.shape_cast %39 : vector<32xf32> to vector<1x32xf32>
    %41 = vector.broadcast %40 : vector<1x32xf32> to vector<8x32xf32>
    %42 = arith.addf %37, %41 : vector<8x32xf32>
    %c0_21 = arith.constant 0 : index
    %c0_22 = arith.constant 0 : index
    %c0_23 = arith.constant 0 : index
    %43 = vector.load %arg9[%c0_21, %c0_22, %c0_23] : memref<2x32x32xf32, #tpu.memory_space<vmem>>, vector<1x32x32xf32>
    %44 = vector.shape_cast %43 : vector<1x32x32xf32> to vector<32x32xf32>
    %cst_24 = arith.constant dense<0.000000e+00> : vector<8x32xf32>
    %45 = tpu.matmul %5, %44, %cst_24 {dimension_numbers = #tpu.dot_dimension_numbers<[1], [0], [0], [1], [0, 0, 1, 1], [], []>} : vector<8x32xf32>, vector<32x32xf32>, vector<8x32xf32> -> vector<8x32xf32>
    %c0_25 = arith.constant 0 : index
    %c0_26 = arith.constant 0 : index
    %46 = vector.load %arg10[%c0_25, %c0_26] : memref<2x32xf32, #tpu.memory_space<vmem>>, vector<1x32xf32>
    %47 = vector.shape_cast %46 : vector<1x32xf32> to vector<32xf32>
    %48 = vector.shape_cast %47 : vector<32xf32> to vector<1x32xf32>
    %49 = vector.broadcast %48 : vector<1x32xf32> to vector<8x32xf32>
    %50 = arith.addf %45, %49 : vector<8x32xf32>
    %c0_27 = arith.constant 0 : index
    %c0_28 = arith.constant 0 : index
    %c0_29 = arith.constant 0 : index
    %51 = vector.load %arg11[%c0_27, %c0_28, %c0_29] : memref<2x32x32xf32, #tpu.memory_space<vmem>>, vector<1x32x32xf32>
    %52 = vector.shape_cast %51 : vector<1x32x32xf32> to vector<32x32xf32>
    %cst_30 = arith.constant dense<0.000000e+00> : vector<8x32xf32>
    %53 = tpu.matmul %5, %52, %cst_30 {dimension_numbers = #tpu.dot_dimension_numbers<[1], [0], [0], [1], [0, 0, 1, 1], [], []>} : vector<8x32xf32>, vector<32x32xf32>, vector<8x32xf32> -> vector<8x32xf32>
    %c0_31 = arith.constant 0 : index
    %c0_32 = arith.constant 0 : index
    %54 = vector.load %arg12[%c0_31, %c0_32] : memref<2x32xf32, #tpu.memory_space<vmem>>, vector<1x32xf32>
    %55 = vector.shape_cast %54 : vector<1x32xf32> to vector<32xf32>
    %56 = vector.shape_cast %55 : vector<32xf32> to vector<1x32xf32>
    %57 = vector.broadcast %56 : vector<1x32xf32> to vector<8x32xf32>
    %58 = arith.addf %53, %57 : vector<8x32xf32>
    %59 = vector.shape_cast %42 : vector<8x32xf32> to vector<8x2x16xf32>
    %60 = vector.shape_cast %50 : vector<8x32xf32> to vector<8x2x16xf32>
    %61 = vector.shape_cast %58 : vector<8x32xf32> to vector<8x2x16xf32>
    "tpu.trace_start"() <{level = 10 : i32, message = "qhd,khd->hqk"}> : () -> ()
    %cst_33 = arith.constant dense<0.000000e+00> : vector<2x8x8xf32>
    %62 = tpu.matmul %59, %60, %cst_33 {dimension_numbers = #tpu.dot_dimension_numbers<[2], [2], [0], [0], [0, 1, 0, 0, 1, 0], [1], [1]>} : vector<8x2x16xf32>, vector<8x2x16xf32>, vector<2x8x8xf32> -> vector<2x8x8xf32>
    "tpu.trace_stop"() : () -> ()
    %63 = vector.shape_cast %6 : vector<8x8xf32> to vector<1x8x8xf32>
    %64 = vector.broadcast %63 : vector<1x8x8xf32> to vector<2x8x8xf32>
    %65 = arith.addf %62, %64 : vector<2x8x8xf32>
    %cst_34 = arith.constant dense<0xFF800000> : vector<2x8xf32>
    %66 = vector.multi_reduction <maximumf>, %65, %cst_34 [2] : vector<2x8x8xf32> to vector<2x8xf32>
    %67 = vector.shape_cast %66 : vector<2x8xf32> to vector<2x8x1xf32>
    %68 = vector.broadcast %67 : vector<2x8x1xf32> to vector<2x8x8xf32>
    %69 = arith.subf %65, %68 : vector<2x8x8xf32>
    %70 = math.exp %69 : vector<2x8x8xf32>
    %cst_35 = arith.constant dense<0.000000e+00> : vector<2x8xf32>
    %71 = vector.multi_reduction <add>, %70, %cst_35 [2] : vector<2x8x8xf32> to vector<2x8xf32>
    %72 = vector.shape_cast %71 : vector<2x8xf32> to vector<2x8x1xf32>
    %73 = tpu.reciprocal %72 {approx = true} : vector<2x8x1xf32> -> vector<2x8x1xf32>
    %74 = vector.broadcast %73 : vector<2x8x1xf32> to vector<2x8x8xf32>
    %75 = arith.mulf %70, %74 : vector<2x8x8xf32>
    "tpu.trace_start"() <{level = 10 : i32, message = "hqk,khd->qhd"}> : () -> ()
    %cst_36 = arith.constant dense<0.000000e+00> : vector<2x16x8xf32>
    %76 = tpu.matmul %61, %75, %cst_36 {dimension_numbers = #tpu.dot_dimension_numbers<[0], [2], [2], [1], [0, 1, 0, 2, 1, 1], [1], [0]>} : vector<8x2x16xf32>, vector<2x8x8xf32>, vector<2x16x8xf32> -> vector<2x16x8xf32>
    %77 = tpu.transpose %76, [2, 0, 1] : vector<2x16x8xf32> -> vector<8x2x16xf32>
    "tpu.trace_stop"() : () -> ()
    %78 = vector.shape_cast %77 : vector<8x2x16xf32> to vector<8x32xf32>
    %c0_37 = arith.constant 0 : index
    %c0_38 = arith.constant 0 : index
    %c0_39 = arith.constant 0 : index
    %79 = vector.load %arg13[%c0_37, %c0_38, %c0_39] : memref<2x32x32xf32, #tpu.memory_space<vmem>>, vector<1x32x32xf32>
    %80 = vector.shape_cast %79 : vector<1x32x32xf32> to vector<32x32xf32>
    %cst_40 = arith.constant dense<0.000000e+00> : vector<8x32xf32>
    %81 = tpu.matmul %78, %80, %cst_40 {dimension_numbers = #tpu.dot_dimension_numbers<[1], [0], [0], [1], [0, 0, 1, 1], [], []>} : vector<8x32xf32>, vector<32x32xf32>, vector<8x32xf32> -> vector<8x32xf32>
    %c0_41 = arith.constant 0 : index
    %c0_42 = arith.constant 0 : index
    %82 = vector.load %arg14[%c0_41, %c0_42] : memref<2x32xf32, #tpu.memory_space<vmem>>, vector<1x32xf32>
    %83 = vector.shape_cast %82 : vector<1x32xf32> to vector<32xf32>
    %84 = vector.shape_cast %83 : vector<32xf32> to vector<1x32xf32>
    %85 = vector.broadcast %84 : vector<1x32xf32> to vector<8x32xf32>
    %86 = arith.addf %81, %85 : vector<8x32xf32>
    %87 = arith.addf %34, %86 : vector<8x32xf32>
    %c0_43 = arith.constant 0 : index
    %c0_44 = arith.constant 0 : index
    %88 = vector.load %arg15[%c0_43, %c0_44] : memref<2x32xf32, #tpu.memory_space<vmem>>, vector<1x32xf32>
    %89 = vector.shape_cast %88 : vector<1x32xf32> to vector<32xf32>
    %c0_45 = arith.constant 0 : index
    %c0_46 = arith.constant 0 : index
    %90 = vector.load %arg16[%c0_45, %c0_46] : memref<2x32xf32, #tpu.memory_space<vmem>>, vector<1x32xf32>
    %91 = vector.shape_cast %90 : vector<1x32xf32> to vector<32xf32>
    %cst_47 = arith.constant dense<0.000000e+00> : vector<8xf32>
    %92 = vector.multi_reduction <add>, %87, %cst_47 [1] : vector<8x32xf32> to vector<8xf32>
    %93 = vector.shape_cast %92 : vector<8xf32> to vector<8x1xf32>
    %cst_48 = arith.constant 3.200000e+01 : f32
    %94 = vector.broadcast %cst_48 : f32 to vector<8x1xf32>
    %95 = arith.divf %93, %94 : vector<8x1xf32>
    %96 = vector.broadcast %95 : vector<8x1xf32> to vector<8x32xf32>
    %97 = arith.subf %87, %96 : vector<8x32xf32>
    %98 = arith.mulf %97, %97 : vector<8x32xf32>
    %cst_49 = arith.constant dense<0.000000e+00> : vector<8xf32>
    %99 = vector.multi_reduction <add>, %98, %cst_49 [1] : vector<8x32xf32> to vector<8xf32>
    %100 = vector.shape_cast %99 : vector<8xf32> to vector<8x1xf32>
    %cst_50 = arith.constant 3.200000e+01 : f32
    %101 = vector.broadcast %cst_50 : f32 to vector<8x1xf32>
    %102 = arith.divf %100, %101 : vector<8x1xf32>
    %103 = vector.broadcast %95 : vector<8x1xf32> to vector<8x32xf32>
    %104 = arith.subf %87, %103 : vector<8x32xf32>
    %cst_51 = arith.constant 9.99999993E-9 : f32
    %105 = vector.broadcast %cst_51 : f32 to vector<8x1xf32>
    %106 = arith.addf %102, %105 : vector<8x1xf32>
    %107 = math.rsqrt %106 : vector<8x1xf32>
    %108 = vector.broadcast %107 : vector<8x1xf32> to vector<8x32xf32>
    %109 = arith.mulf %104, %108 : vector<8x32xf32>
    %110 = vector.shape_cast %89 : vector<32xf32> to vector<1x32xf32>
    %111 = vector.broadcast %110 : vector<1x32xf32> to vector<8x32xf32>
    %112 = arith.mulf %109, %111 : vector<8x32xf32>
    %113 = vector.shape_cast %91 : vector<32xf32> to vector<1x32xf32>
    %114 = vector.broadcast %113 : vector<1x32xf32> to vector<8x32xf32>
    %115 = arith.addf %112, %114 : vector<8x32xf32>
    %c0_52 = arith.constant 0 : index
    %c0_53 = arith.constant 0 : index
    %c0_54 = arith.constant 0 : index
    %116 = vector.load %arg17[%c0_52, %c0_53, %c0_54] : memref<2x32x32xf32, #tpu.memory_space<vmem>>, vector<1x32x32xf32>
    %117 = vector.shape_cast %116 : vector<1x32x32xf32> to vector<32x32xf32>
    %cst_55 = arith.constant dense<0.000000e+00> : vector<8x32xf32>
    %118 = tpu.matmul %115, %117, %cst_55 {dimension_numbers = #tpu.dot_dimension_numbers<[1], [0], [0], [1], [0, 0, 1, 1], [], []>} : vector<8x32xf32>, vector<32x32xf32>, vector<8x32xf32> -> vector<8x32xf32>
    %c0_56 = arith.constant 0 : index
    %c0_57 = arith.constant 0 : index
    %119 = vector.load %arg18[%c0_56, %c0_57] : memref<2x32xf32, #tpu.memory_space<vmem>>, vector<1x32xf32>
    %120 = vector.shape_cast %119 : vector<1x32xf32> to vector<32xf32>
    %121 = vector.shape_cast %120 : vector<32xf32> to vector<1x32xf32>
    %122 = vector.broadcast %121 : vector<1x32xf32> to vector<8x32xf32>
    %123 = arith.addf %118, %122 : vector<8x32xf32>
    %cst_58 = arith.constant 0.000000e+00 : f32
    %124 = vector.broadcast %cst_58 : f32 to vector<8x32xf32>
    %125 = arith.maximumf %123, %124 : vector<8x32xf32>
    %c0_59 = arith.constant 0 : index
    %c0_60 = arith.constant 0 : index
    %c0_61 = arith.constant 0 : index
    %126 = vector.load %arg19[%c0_59, %c0_60, %c0_61] : memref<2x32x32xf32, #tpu.memory_space<vmem>>, vector<1x32x32xf32>
    %127 = vector.shape_cast %126 : vector<1x32x32xf32> to vector<32x32xf32>
    %cst_62 = arith.constant dense<0.000000e+00> : vector<8x32xf32>
    %128 = tpu.matmul %125, %127, %cst_62 {dimension_numbers = #tpu.dot_dimension_numbers<[1], [0], [0], [1], [0, 0, 1, 1], [], []>} : vector<8x32xf32>, vector<32x32xf32>, vector<8x32xf32> -> vector<8x32xf32>
    %c0_63 = arith.constant 0 : index
    %c0_64 = arith.constant 0 : index
    %129 = vector.load %arg20[%c0_63, %c0_64] : memref<2x32xf32, #tpu.memory_space<vmem>>, vector<1x32xf32>
    %130 = vector.shape_cast %129 : vector<1x32xf32> to vector<32xf32>
    %131 = vector.shape_cast %130 : vector<32xf32> to vector<1x32xf32>
    %132 = vector.broadcast %131 : vector<1x32xf32> to vector<8x32xf32>
    %133 = arith.addf %128, %132 : vector<8x32xf32>
    %134 = arith.addf %133, %115 : vector<8x32xf32>
    %135 = vector.broadcast %1 : vector<8x1xf32> to vector<8x32xf32>
    %136 = arith.mulf %134, %135 : vector<8x32xf32>
    %c1 = arith.constant 1 : index
    %c0_65 = arith.constant 0 : index
    %137 = vector.load %arg5[%c1, %c0_65] : memref<2x32xf32, #tpu.memory_space<vmem>>, vector<1x32xf32>
    %138 = vector.shape_cast %137 : vector<1x32xf32> to vector<32xf32>
    %c1_66 = arith.constant 1 : index
    %c0_67 = arith.constant 0 : index
    %139 = vector.load %arg6[%c1_66, %c0_67] : memref<2x32xf32, #tpu.memory_space<vmem>>, vector<1x32xf32>
    %140 = vector.shape_cast %139 : vector<1x32xf32> to vector<32xf32>
    %cst_68 = arith.constant dense<0.000000e+00> : vector<8xf32>
    %141 = vector.multi_reduction <add>, %136, %cst_68 [1] : vector<8x32xf32> to vector<8xf32>
    %142 = vector.shape_cast %141 : vector<8xf32> to vector<8x1xf32>
    %cst_69 = arith.constant 3.200000e+01 : f32
    %143 = vector.broadcast %cst_69 : f32 to vector<8x1xf32>
    %144 = arith.divf %142, %143 : vector<8x1xf32>
    %145 = vector.broadcast %144 : vector<8x1xf32> to vector<8x32xf32>
    %146 = arith.subf %136, %145 : vector<8x32xf32>
    %147 = arith.mulf %146, %146 : vector<8x32xf32>
    %cst_70 = arith.constant dense<0.000000e+00> : vector<8xf32>
    %148 = vector.multi_reduction <add>, %147, %cst_70 [1] : vector<8x32xf32> to vector<8xf32>
    %149 = vector.shape_cast %148 : vector<8xf32> to vector<8x1xf32>
    %cst_71 = arith.constant 3.200000e+01 : f32
    %150 = vector.broadcast %cst_71 : f32 to vector<8x1xf32>
    %151 = arith.divf %149, %150 : vector<8x1xf32>
    %152 = vector.broadcast %144 : vector<8x1xf32> to vector<8x32xf32>
    %153 = arith.subf %136, %152 : vector<8x32xf32>
    %cst_72 = arith.constant 9.99999993E-9 : f32
    %154 = vector.broadcast %cst_72 : f32 to vector<8x1xf32>
    %155 = arith.addf %151, %154 : vector<8x1xf32>
    %156 = math.rsqrt %155 : vector<8x1xf32>
    %157 = vector.broadcast %156 : vector<8x1xf32> to vector<8x32xf32>
    %158 = arith.mulf %153, %157 : vector<8x32xf32>
    %159 = vector.shape_cast %138 : vector<32xf32> to vector<1x32xf32>
    %160 = vector.broadcast %159 : vector<1x32xf32> to vector<8x32xf32>
    %161 = arith.mulf %158, %160 : vector<8x32xf32>
    %162 = vector.shape_cast %140 : vector<32xf32> to vector<1x32xf32>
    %163 = vector.broadcast %162 : vector<1x32xf32> to vector<8x32xf32>
    %164 = arith.addf %161, %163 : vector<8x32xf32>
    %c1_73 = arith.constant 1 : index
    %c0_74 = arith.constant 0 : index
    %c0_75 = arith.constant 0 : index
    %165 = vector.load %arg7[%c1_73, %c0_74, %c0_75] : memref<2x32x32xf32, #tpu.memory_space<vmem>>, vector<1x32x32xf32>
    %166 = vector.shape_cast %165 : vector<1x32x32xf32> to vector<32x32xf32>
    %cst_76 = arith.constant dense<0.000000e+00> : vector<8x32xf32>
    %167 = tpu.matmul %164, %166, %cst_76 {dimension_numbers = #tpu.dot_dimension_numbers<[1], [0], [0], [1], [0, 0, 1, 1], [], []>} : vector<8x32xf32>, vector<32x32xf32>, vector<8x32xf32> -> vector<8x32xf32>
    %c1_77 = arith.constant 1 : index
    %c0_78 = arith.constant 0 : index
    %168 = vector.load %arg8[%c1_77, %c0_78] : memref<2x32xf32, #tpu.memory_space<vmem>>, vector<1x32xf32>
    %169 = vector.shape_cast %168 : vector<1x32xf32> to vector<32xf32>
    %170 = vector.shape_cast %169 : vector<32xf32> to vector<1x32xf32>
    %171 = vector.broadcast %170 : vector<1x32xf32> to vector<8x32xf32>
    %172 = arith.addf %167, %171 : vector<8x32xf32>
    %c1_79 = arith.constant 1 : index
    %c0_80 = arith.constant 0 : index
    %c0_81 = arith.constant 0 : index
    %173 = vector.load %arg9[%c1_79, %c0_80, %c0_81] : memref<2x32x32xf32, #tpu.memory_space<vmem>>, vector<1x32x32xf32>
    %174 = vector.shape_cast %173 : vector<1x32x32xf32> to vector<32x32xf32>
    %cst_82 = arith.constant dense<0.000000e+00> : vector<8x32xf32>
    %175 = tpu.matmul %136, %174, %cst_82 {dimension_numbers = #tpu.dot_dimension_numbers<[1], [0], [0], [1], [0, 0, 1, 1], [], []>} : vector<8x32xf32>, vector<32x32xf32>, vector<8x32xf32> -> vector<8x32xf32>
    %c1_83 = arith.constant 1 : index
    %c0_84 = arith.constant 0 : index
    %176 = vector.load %arg10[%c1_83, %c0_84] : memref<2x32xf32, #tpu.memory_space<vmem>>, vector<1x32xf32>
    %177 = vector.shape_cast %176 : vector<1x32xf32> to vector<32xf32>
    %178 = vector.shape_cast %177 : vector<32xf32> to vector<1x32xf32>
    %179 = vector.broadcast %178 : vector<1x32xf32> to vector<8x32xf32>
    %180 = arith.addf %175, %179 : vector<8x32xf32>
    %c1_85 = arith.constant 1 : index
    %c0_86 = arith.constant 0 : index
    %c0_87 = arith.constant 0 : index
    %181 = vector.load %arg11[%c1_85, %c0_86, %c0_87] : memref<2x32x32xf32, #tpu.memory_space<vmem>>, vector<1x32x32xf32>
    %182 = vector.shape_cast %181 : vector<1x32x32xf32> to vector<32x32xf32>
    %cst_88 = arith.constant dense<0.000000e+00> : vector<8x32xf32>
    %183 = tpu.matmul %136, %182, %cst_88 {dimension_numbers = #tpu.dot_dimension_numbers<[1], [0], [0], [1], [0, 0, 1, 1], [], []>} : vector<8x32xf32>, vector<32x32xf32>, vector<8x32xf32> -> vector<8x32xf32>
    %c1_89 = arith.constant 1 : index
    %c0_90 = arith.constant 0 : index
    %184 = vector.load %arg12[%c1_89, %c0_90] : memref<2x32xf32, #tpu.memory_space<vmem>>, vector<1x32xf32>
    %185 = vector.shape_cast %184 : vector<1x32xf32> to vector<32xf32>
    %186 = vector.shape_cast %185 : vector<32xf32> to vector<1x32xf32>
    %187 = vector.broadcast %186 : vector<1x32xf32> to vector<8x32xf32>
    %188 = arith.addf %183, %187 : vector<8x32xf32>
    %189 = vector.shape_cast %172 : vector<8x32xf32> to vector<8x2x16xf32>
    %190 = vector.shape_cast %180 : vector<8x32xf32> to vector<8x2x16xf32>
    %191 = vector.shape_cast %188 : vector<8x32xf32> to vector<8x2x16xf32>
    "tpu.trace_start"() <{level = 10 : i32, message = "qhd,khd->hqk"}> : () -> ()
    %cst_91 = arith.constant dense<0.000000e+00> : vector<2x8x8xf32>
    %192 = tpu.matmul %189, %190, %cst_91 {dimension_numbers = #tpu.dot_dimension_numbers<[2], [2], [0], [0], [0, 1, 0, 0, 1, 0], [1], [1]>} : vector<8x2x16xf32>, vector<8x2x16xf32>, vector<2x8x8xf32> -> vector<2x8x8xf32>
    "tpu.trace_stop"() : () -> ()
    %193 = vector.shape_cast %6 : vector<8x8xf32> to vector<1x8x8xf32>
    %194 = vector.broadcast %193 : vector<1x8x8xf32> to vector<2x8x8xf32>
    %195 = arith.addf %192, %194 : vector<2x8x8xf32>
    %cst_92 = arith.constant dense<0xFF800000> : vector<2x8xf32>
    %196 = vector.multi_reduction <maximumf>, %195, %cst_92 [2] : vector<2x8x8xf32> to vector<2x8xf32>
    %197 = vector.shape_cast %196 : vector<2x8xf32> to vector<2x8x1xf32>
    %198 = vector.broadcast %197 : vector<2x8x1xf32> to vector<2x8x8xf32>
    %199 = arith.subf %195, %198 : vector<2x8x8xf32>
    %200 = math.exp %199 : vector<2x8x8xf32>
    %cst_93 = arith.constant dense<0.000000e+00> : vector<2x8xf32>
    %201 = vector.multi_reduction <add>, %200, %cst_93 [2] : vector<2x8x8xf32> to vector<2x8xf32>
    %202 = vector.shape_cast %201 : vector<2x8xf32> to vector<2x8x1xf32>
    %203 = tpu.reciprocal %202 {approx = true} : vector<2x8x1xf32> -> vector<2x8x1xf32>
    %204 = vector.broadcast %203 : vector<2x8x1xf32> to vector<2x8x8xf32>
    %205 = arith.mulf %200, %204 : vector<2x8x8xf32>
    "tpu.trace_start"() <{level = 10 : i32, message = "hqk,khd->qhd"}> : () -> ()
    %cst_94 = arith.constant dense<0.000000e+00> : vector<2x16x8xf32>
    %206 = tpu.matmul %191, %205, %cst_94 {dimension_numbers = #tpu.dot_dimension_numbers<[0], [2], [2], [1], [0, 1, 0, 2, 1, 1], [1], [0]>} : vector<8x2x16xf32>, vector<2x8x8xf32>, vector<2x16x8xf32> -> vector<2x16x8xf32>
    %207 = tpu.transpose %206, [2, 0, 1] : vector<2x16x8xf32> -> vector<8x2x16xf32>
    "tpu.trace_stop"() : () -> ()
    %208 = vector.shape_cast %207 : vector<8x2x16xf32> to vector<8x32xf32>
    %c1_95 = arith.constant 1 : index
    %c0_96 = arith.constant 0 : index
    %c0_97 = arith.constant 0 : index
    %209 = vector.load %arg13[%c1_95, %c0_96, %c0_97] : memref<2x32x32xf32, #tpu.memory_space<vmem>>, vector<1x32x32xf32>
    %210 = vector.shape_cast %209 : vector<1x32x32xf32> to vector<32x32xf32>
    %cst_98 = arith.constant dense<0.000000e+00> : vector<8x32xf32>
    %211 = tpu.matmul %208, %210, %cst_98 {dimension_numbers = #tpu.dot_dimension_numbers<[1], [0], [0], [1], [0, 0, 1, 1], [], []>} : vector<8x32xf32>, vector<32x32xf32>, vector<8x32xf32> -> vector<8x32xf32>
    %c1_99 = arith.constant 1 : index
    %c0_100 = arith.constant 0 : index
    %212 = vector.load %arg14[%c1_99, %c0_100] : memref<2x32xf32, #tpu.memory_space<vmem>>, vector<1x32xf32>
    %213 = vector.shape_cast %212 : vector<1x32xf32> to vector<32xf32>
    %214 = vector.shape_cast %213 : vector<32xf32> to vector<1x32xf32>
    %215 = vector.broadcast %214 : vector<1x32xf32> to vector<8x32xf32>
    %216 = arith.addf %211, %215 : vector<8x32xf32>
    %217 = arith.addf %164, %216 : vector<8x32xf32>
    %c1_101 = arith.constant 1 : index
    %c0_102 = arith.constant 0 : index
    %218 = vector.load %arg15[%c1_101, %c0_102] : memref<2x32xf32, #tpu.memory_space<vmem>>, vector<1x32xf32>
    %219 = vector.shape_cast %218 : vector<1x32xf32> to vector<32xf32>
    %c1_103 = arith.constant 1 : index
    %c0_104 = arith.constant 0 : index
    %220 = vector.load %arg16[%c1_103, %c0_104] : memref<2x32xf32, #tpu.memory_space<vmem>>, vector<1x32xf32>
    %221 = vector.shape_cast %220 : vector<1x32xf32> to vector<32xf32>
    %cst_105 = arith.constant dense<0.000000e+00> : vector<8xf32>
    %222 = vector.multi_reduction <add>, %217, %cst_105 [1] : vector<8x32xf32> to vector<8xf32>
    %223 = vector.shape_cast %222 : vector<8xf32> to vector<8x1xf32>
    %cst_106 = arith.constant 3.200000e+01 : f32
    %224 = vector.broadcast %cst_106 : f32 to vector<8x1xf32>
    %225 = arith.divf %223, %224 : vector<8x1xf32>
    %226 = vector.broadcast %225 : vector<8x1xf32> to vector<8x32xf32>
    %227 = arith.subf %217, %226 : vector<8x32xf32>
    %228 = arith.mulf %227, %227 : vector<8x32xf32>
    %cst_107 = arith.constant dense<0.000000e+00> : vector<8xf32>
    %229 = vector.multi_reduction <add>, %228, %cst_107 [1] : vector<8x32xf32> to vector<8xf32>
    %230 = vector.shape_cast %229 : vector<8xf32> to vector<8x1xf32>
    %cst_108 = arith.constant 3.200000e+01 : f32
    %231 = vector.broadcast %cst_108 : f32 to vector<8x1xf32>
    %232 = arith.divf %230, %231 : vector<8x1xf32>
    %233 = vector.broadcast %225 : vector<8x1xf32> to vector<8x32xf32>
    %234 = arith.subf %217, %233 : vector<8x32xf32>
    %cst_109 = arith.constant 9.99999993E-9 : f32
    %235 = vector.broadcast %cst_109 : f32 to vector<8x1xf32>
    %236 = arith.addf %232, %235 : vector<8x1xf32>
    %237 = math.rsqrt %236 : vector<8x1xf32>
    %238 = vector.broadcast %237 : vector<8x1xf32> to vector<8x32xf32>
    %239 = arith.mulf %234, %238 : vector<8x32xf32>
    %240 = vector.shape_cast %219 : vector<32xf32> to vector<1x32xf32>
    %241 = vector.broadcast %240 : vector<1x32xf32> to vector<8x32xf32>
    %242 = arith.mulf %239, %241 : vector<8x32xf32>
    %243 = vector.shape_cast %221 : vector<32xf32> to vector<1x32xf32>
    %244 = vector.broadcast %243 : vector<1x32xf32> to vector<8x32xf32>
    %245 = arith.addf %242, %244 : vector<8x32xf32>
    %c1_110 = arith.constant 1 : index
    %c0_111 = arith.constant 0 : index
    %c0_112 = arith.constant 0 : index
    %246 = vector.load %arg17[%c1_110, %c0_111, %c0_112] : memref<2x32x32xf32, #tpu.memory_space<vmem>>, vector<1x32x32xf32>
    %247 = vector.shape_cast %246 : vector<1x32x32xf32> to vector<32x32xf32>
    %cst_113 = arith.constant dense<0.000000e+00> : vector<8x32xf32>
    %248 = tpu.matmul %245, %247, %cst_113 {dimension_numbers = #tpu.dot_dimension_numbers<[1], [0], [0], [1], [0, 0, 1, 1], [], []>} : vector<8x32xf32>, vector<32x32xf32>, vector<8x32xf32> -> vector<8x32xf32>
    %c1_114 = arith.constant 1 : index
    %c0_115 = arith.constant 0 : index
    %249 = vector.load %arg18[%c1_114, %c0_115] : memref<2x32xf32, #tpu.memory_space<vmem>>, vector<1x32xf32>
    %250 = vector.shape_cast %249 : vector<1x32xf32> to vector<32xf32>
    %251 = vector.shape_cast %250 : vector<32xf32> to vector<1x32xf32>
    %252 = vector.broadcast %251 : vector<1x32xf32> to vector<8x32xf32>
    %253 = arith.addf %248, %252 : vector<8x32xf32>
    %cst_116 = arith.constant 0.000000e+00 : f32
    %254 = vector.broadcast %cst_116 : f32 to vector<8x32xf32>
    %255 = arith.maximumf %253, %254 : vector<8x32xf32>
    %c1_117 = arith.constant 1 : index
    %c0_118 = arith.constant 0 : index
    %c0_119 = arith.constant 0 : index
    %256 = vector.load %arg19[%c1_117, %c0_118, %c0_119] : memref<2x32x32xf32, #tpu.memory_space<vmem>>, vector<1x32x32xf32>
    %257 = vector.shape_cast %256 : vector<1x32x32xf32> to vector<32x32xf32>
    %cst_120 = arith.constant dense<0.000000e+00> : vector<8x32xf32>
    %258 = tpu.matmul %255, %257, %cst_120 {dimension_numbers = #tpu.dot_dimension_numbers<[1], [0], [0], [1], [0, 0, 1, 1], [], []>} : vector<8x32xf32>, vector<32x32xf32>, vector<8x32xf32> -> vector<8x32xf32>
    %c1_121 = arith.constant 1 : index
    %c0_122 = arith.constant 0 : index
    %259 = vector.load %arg20[%c1_121, %c0_122] : memref<2x32xf32, #tpu.memory_space<vmem>>, vector<1x32xf32>
    %260 = vector.shape_cast %259 : vector<1x32xf32> to vector<32xf32>
    %261 = vector.shape_cast %260 : vector<32xf32> to vector<1x32xf32>
    %262 = vector.broadcast %261 : vector<1x32xf32> to vector<8x32xf32>
    %263 = arith.addf %258, %262 : vector<8x32xf32>
    %264 = arith.addf %263, %245 : vector<8x32xf32>
    %265 = vector.broadcast %1 : vector<8x1xf32> to vector<8x32xf32>
    %266 = arith.mulf %264, %265 : vector<8x32xf32>
    %c0_123 = arith.constant 0 : index
    %c0_124 = arith.constant 0 : index
    %267 = vector.load %arg21[%c0_123, %c0_124] : memref<1x32xf32, #tpu.memory_space<vmem>>, vector<1x32xf32>
    %268 = vector.shape_cast %267 : vector<1x32xf32> to vector<32xf32>
    %c0_125 = arith.constant 0 : index
    %c0_126 = arith.constant 0 : index
    %269 = vector.load %arg22[%c0_125, %c0_126] : memref<1x32xf32, #tpu.memory_space<vmem>>, vector<1x32xf32>
    %270 = vector.shape_cast %269 : vector<1x32xf32> to vector<32xf32>
    %cst_127 = arith.constant dense<0.000000e+00> : vector<8xf32>
    %271 = vector.multi_reduction <add>, %266, %cst_127 [1] : vector<8x32xf32> to vector<8xf32>
    %272 = vector.shape_cast %271 : vector<8xf32> to vector<8x1xf32>
    %cst_128 = arith.constant 3.200000e+01 : f32
    %273 = vector.broadcast %cst_128 : f32 to vector<8x1xf32>
    %274 = arith.divf %272, %273 : vector<8x1xf32>
    %275 = vector.broadcast %274 : vector<8x1xf32> to vector<8x32xf32>
    %276 = arith.subf %266, %275 : vector<8x32xf32>
    %277 = arith.mulf %276, %276 : vector<8x32xf32>
    %cst_129 = arith.constant dense<0.000000e+00> : vector<8xf32>
    %278 = vector.multi_reduction <add>, %277, %cst_129 [1] : vector<8x32xf32> to vector<8xf32>
    %279 = vector.shape_cast %278 : vector<8xf32> to vector<8x1xf32>
    %cst_130 = arith.constant 3.200000e+01 : f32
    %280 = vector.broadcast %cst_130 : f32 to vector<8x1xf32>
    %281 = arith.divf %279, %280 : vector<8x1xf32>
    %282 = vector.broadcast %274 : vector<8x1xf32> to vector<8x32xf32>
    %283 = arith.subf %266, %282 : vector<8x32xf32>
    %cst_131 = arith.constant 9.99999993E-9 : f32
    %284 = vector.broadcast %cst_131 : f32 to vector<8x1xf32>
    %285 = arith.addf %281, %284 : vector<8x1xf32>
    %286 = math.rsqrt %285 : vector<8x1xf32>
    %287 = vector.broadcast %286 : vector<8x1xf32> to vector<8x32xf32>
    %288 = arith.mulf %283, %287 : vector<8x32xf32>
    %289 = vector.shape_cast %268 : vector<32xf32> to vector<1x32xf32>
    %290 = vector.broadcast %289 : vector<1x32xf32> to vector<8x32xf32>
    %291 = arith.mulf %288, %290 : vector<8x32xf32>
    %292 = vector.shape_cast %270 : vector<32xf32> to vector<1x32xf32>
    %293 = vector.broadcast %292 : vector<1x32xf32> to vector<8x32xf32>
    %294 = arith.addf %291, %293 : vector<8x32xf32>
    %c0_132 = arith.constant 0 : index
    %c0_133 = arith.constant 0 : index
    %c0_134 = arith.constant 0 : index
    %c0_135 = arith.constant 0 : index
    %295 = vector.load %arg4[%c0_132, %c0_133, %c0_134, %c0_135] : memref<1x2x8x32xf32, #tpu.memory_space<vmem>>, vector<1x2x8x32xf32>
    %296 = vector.shape_cast %295 : vector<1x2x8x32xf32> to vector<2x8x32xf32>
    %297 = vector.shape_cast %294 : vector<8x32xf32> to vector<1x8x32xf32>
    %298 = vector.broadcast %297 : vector<1x8x32xf32> to vector<2x8x32xf32>
    %299 = arith.mulf %298, %296 : vector<2x8x32xf32>
    %cst_136 = arith.constant dense<0.000000e+00> : vector<2x8xf32>
    %300 = vector.multi_reduction <add>, %299, %cst_136 [2] : vector<2x8x32xf32> to vector<2x8xf32>
    %301 = vector.shape_cast %300 : vector<2x8xf32> to vector<1x2x8xf32>
    %c0_137 = arith.constant 0 : index
    %c0_138 = arith.constant 0 : index
    %c0_139 = arith.constant 0 : index
    %302 = vector.load %arg23[%c0_137, %c0_138, %c0_139] : memref<1x2x8xf32, #tpu.memory_space<vmem>>, vector<1x2x8xf32>
    tpu.vector_store %arg23[%c0_137, %c0_138, %c0_139], %301 {strides = array<i32>} : memref<1x2x8xf32, #tpu.memory_space<vmem>>, vector<1x2x8xf32>,
    return
  }
  func.func @transform_0(%arg0: i32) -> (i32, i32, i32) {
    %c0_i32 = arith.constant 0 : i32
    %c0_i32_0 = arith.constant 0 : i32
    %c0_i32_1 = arith.constant 0 : i32
    return %arg0, %c0_i32, %c0_i32_0 : i32, i32, i32
  }
  func.func @transform_1(%arg0: i32) -> (i32, i32, i32) {
    %c0_i32 = arith.constant 0 : i32
    %c0_i32_0 = arith.constant 0 : i32
    %c0_i32_1 = arith.constant 0 : i32
    return %arg0, %c0_i32, %c0_i32_0 : i32, i32, i32
  }
  func.func @transform_2(%arg0: i32) -> (i32, i32) {
    %c0_i32 = arith.constant 0 : i32
    %c0_i32_0 = arith.constant 0 : i32
    %c0_i32_1 = arith.constant 0 : i32
    return %c0_i32, %c0_i32_0 : i32, i32
  }
  func.func @transform_3(%arg0: i32) -> (i32, i32, i32, i32) {
    %c0_i32 = arith.constant 0 : i32
    %c0_i32_0 = arith.constant 0 : i32
    %c0_i32_1 = arith.constant 0 : i32
    %c0_i32_2 = arith.constant 0 : i32
    return %arg0, %c0_i32, %c0_i32_0, %c0_i32_1 : i32, i32, i32, i32
  }
  func.func @transform_4(%arg0: i32) -> (i32, i32) {
    %c0_i32 = arith.constant 0 : i32
    %c0_i32_0 = arith.constant 0 : i32
    %c0_i32_1 = arith.constant 0 : i32
    return %c0_i32, %c0_i32_0 : i32, i32
  }
  func.func @transform_5(%arg0: i32) -> (i32, i32) {
    %c0_i32 = arith.constant 0 : i32
    %c0_i32_0 = arith.constant 0 : i32
    %c0_i32_1 = arith.constant 0 : i32
    return %c0_i32, %c0_i32_0 : i32, i32
  }
  func.func @transform_6(%arg0: i32) -> (i32, i32, i32) {
    %c0_i32 = arith.constant 0 : i32
    %c0_i32_0 = arith.constant 0 : i32
    %c0_i32_1 = arith.constant 0 : i32
    %c0_i32_2 = arith.constant 0 : i32
    return %c0_i32, %c0_i32_0, %c0_i32_1 : i32, i32, i32
  }
  func.func @transform_7(%arg0: i32) -> (i32, i32) {
    %c0_i32 = arith.constant 0 : i32
    %c0_i32_0 = arith.constant 0 : i32
    %c0_i32_1 = arith.constant 0 : i32
    return %c0_i32, %c0_i32_0 : i32, i32
  }
  func.func @transform_8(%arg0: i32) -> (i32, i32, i32) {
    %c0_i32 = arith.constant 0 : i32
    %c0_i32_0 = arith.constant 0 : i32
    %c0_i32_1 = arith.constant 0 : i32
    %c0_i32_2 = arith.constant 0 : i32
    return %c0_i32, %c0_i32_0, %c0_i32_1 : i32, i32, i32
  }
  func.func @transform_9(%arg0: i32) -> (i32, i32) {
    %c0_i32 = arith.constant 0 : i32
    %c0_i32_0 = arith.constant 0 : i32
    %c0_i32_1 = arith.constant 0 : i32
    return %c0_i32, %c0_i32_0 : i32, i32
  }
  func.func @transform_10(%arg0: i32) -> (i32, i32, i32) {
    %c0_i32 = arith.constant 0 : i32
    %c0_i32_0 = arith.constant 0 : i32
    %c0_i32_1 = arith.constant 0 : i32
    %c0_i32_2 = arith.constant 0 : i32
    return %c0_i32, %c0_i32_0, %c0_i32_1 : i32, i32, i32
  }
  func.func @transform_11(%arg0: i32) -> (i32, i32) {
    %c0_i32 = arith.constant 0 : i32
    %c0_i32_0 = arith.constant 0 : i32
    %c0_i32_1 = arith.constant 0 : i32
    return %c0_i32, %c0_i32_0 : i32, i32
  }
  func.func @transform_12(%arg0: i32) -> (i32, i32, i32) {
    %c0_i32 = arith.constant 0 : i32
    %c0_i32_0 = arith.constant 0 : i32
    %c0_i32_1 = arith.constant 0 : i32
    %c0_i32_2 = arith.constant 0 : i32
    return %c0_i32, %c0_i32_0, %c0_i32_1 : i32, i32, i32
  }
  func.func @transform_13(%arg0: i32) -> (i32, i32) {
    %c0_i32 = arith.constant 0 : i32
    %c0_i32_0 = arith.constant 0 : i32
    %c0_i32_1 = arith.constant 0 : i32
    return %c0_i32, %c0_i32_0 : i32, i32
  }
  func.func @transform_14(%arg0: i32) -> (i32, i32) {
    %c0_i32 = arith.constant 0 : i32
    %c0_i32_0 = arith.constant 0 : i32
    %c0_i32_1 = arith.constant 0 : i32
    return %c0_i32, %c0_i32_0 : i32, i32
  }
  func.func @transform_15(%arg0: i32) -> (i32, i32) {
    %c0_i32 = arith.constant 0 : i32
    %c0_i32_0 = arith.constant 0 : i32
    %c0_i32_1 = arith.constant 0 : i32
    return %c0_i32, %c0_i32_0 : i32, i32
  }
  func.func @transform_16(%arg0: i32) -> (i32, i32, i32) {
    %c0_i32 = arith.constant 0 : i32
    %c0_i32_0 = arith.constant 0 : i32
    %c0_i32_1 = arith.constant 0 : i32
    %c0_i32_2 = arith.constant 0 : i32
    return %c0_i32, %c0_i32_0, %c0_i32_1 : i32, i32, i32
  }
  func.func @transform_17(%arg0: i32) -> (i32, i32) {
    %c0_i32 = arith.constant 0 : i32
    %c0_i32_0 = arith.constant 0 : i32
    %c0_i32_1 = arith.constant 0 : i32
    return %c0_i32, %c0_i32_0 : i32, i32
  }
  func.func @transform_18(%arg0: i32) -> (i32, i32, i32) {
    %c0_i32 = arith.constant 0 : i32
    %c0_i32_0 = arith.constant 0 : i32
    %c0_i32_1 = arith.constant 0 : i32
    %c0_i32_2 = arith.constant 0 : i32
    return %c0_i32, %c0_i32_0, %c0_i32_1 : i32, i32, i32
  }
  func.func @transform_19(%arg0: i32) -> (i32, i32) {
    %c0_i32 = arith.constant 0 : i32
    %c0_i32_0 = arith.constant 0 : i32
    %c0_i32_1 = arith.constant 0 : i32
    return %c0_i32, %c0_i32_0 : i32, i32
  }
  func.func @transform_20(%arg0: i32) -> (i32, i32) {
    %c0_i32 = arith.constant 0 : i32
    %c0_i32_0 = arith.constant 0 : i32
    %c0_i32_1 = arith.constant 0 : i32
    return %c0_i32, %c0_i32_0 : i32, i32
  }
  func.func @transform_21(%arg0: i32) -> (i32, i32) {
    %c0_i32 = arith.constant 0 : i32
    %c0_i32_0 = arith.constant 0 : i32
    %c0_i32_1 = arith.constant 0 : i32
    return %c0_i32, %c0_i32_0 : i32, i32
  }
  func.func @transform_22(%arg0: i32) -> (i32, i32, i32) {
    %c0_i32 = arith.constant 0 : i32
    %c0_i32_0 = arith.constant 0 : i32
    %c0_i32_1 = arith.constant 0 : i32
    return %arg0, %c0_i32, %c0_i32_0 : i32, i32, i32
  }
}

</mosaic_0001>

<bundles_post_ra>
// kernel: tpu_custom_call.1
= control target key start
LH: loop header
LB: loop body
LE: loop exit
PB: predicated region body
PF: predicated region fallthrough
CT: control target
= control target key end

     0   :  { %s3589_s0 = inlined_call_operand.vmem [shape: f32[2,8,32], index: 0, kind: input, shape index: {}]   ;;  %s3590_s1 = inlined_call_operand.vmem [shape: f32[2,8,1], index: 1, kind: input, shape index: {}]   ;;  %s3591_s2 = inlined_call_operand.hbm [shape: f32[8,8], index: 2, kind: input, shape index: {}]   ;;  %s3592_s3 = inlined_call_operand.hbm [shape: f32[2,2,8,32], index: 3, kind: input, shape index: {}]   ;;  %s3593_s4 = inlined_call_operand.vmem [shape: f32[2,32], index: 4, kind: input, shape index: {}]   ;;  %s3594_s5 = inlined_call_operand.vmem [shape: f32[2,32], index: 5, kind: input, shape index: {}]   ;;  %s3595_s6 = inlined_call_operand.hbm [shape: f32[2,32,32], index: 6, kind: input, shape index: {}]   ;;  %s3596_s7 = inlined_call_operand.vmem [shape: f32[2,32], index: 7, kind: input, shape index: {}]   ;;  %s3597_s8 = inlined_call_operand.hbm [shape: f32[2,32,32], index: 8, kind: input, shape index: {}]   ;;  %s3598_s9 = inlined_call_operand.vmem [shape: f32[2,32], index: 9, kind: input, shape index: {}]   ;;  %s3599_s10 = inlined_call_operand.hbm [shape: f32[2,32,32], index: 10, kind: input, shape index: {}]   ;;  %s3600_s11 = inlined_call_operand.vmem [shape: f32[2,32], index: 11, kind: input, shape index: {}]   ;;  %s3601_s12 = inlined_call_operand.hbm [shape: f32[2,32,32], index: 12, kind: input, shape index: {}]   ;;  %s3602_s13 = inlined_call_operand.vmem [shape: f32[2,32], index: 13, kind: input, shape index: {}]   ;;  %s3603_s14 = inlined_call_operand.vmem [shape: f32[2,32], index: 14, kind: input, shape index: {}]   ;;  %s3604_s15 = inlined_call_operand.vmem [shape: f32[2,32], index: 15, kind: input, shape index: {}]   ;;  %s3605_s16 = inlined_call_operand.hbm [shape: f32[2,32,32], index: 16, kind: input, shape index: {}]   ;;  %s3606_s17 = inlined_call_operand.vmem [shape: f32[2,32], index: 17, kind: input, shape index: {}]   ;;  %s3607_s18 = inlined_call_operand.hbm [shape: f32[2,32,32], index: 18, kind: input, shape index: {}]   ;;  %s3608_s19 = inlined_call_operand.vmem [shape: f32[2,32], index: 19, kind: input, shape index: {}]   ;;  %s3609_s20 = inlined_call_operand.vmem [shape: f32[1,32], index: 20, kind: input, shape index: {}]   ;;  %s3610_s21 = inlined_call_operand.vmem [shape: f32[1,32], index: 21, kind: input, shape index: {}]   ;;  %s3611_s22 = inlined_call_operand.hbm [shape: f32[2,2,8], index: 22, kind: output, shape index: {}]  }
   0x1   :  { %3621 = sst [smem:[#allocation26_spill]] %s3589_s0 }
   0x2   :  { %3622 = sst [smem:[#allocation27_spill]] %s3590_s1 }
   0x3   :  { %3623 = sst [smem:[#allocation28_spill]] %s3591_s2 }
   0x4   :  { %3624 = sst [smem:[#allocation29_spill]] %s3592_s3 }
   0x5   :  { %3625 = sst [smem:[#allocation30_spill]] %s3593_s4 }
   0x6   :  { %3626 = sst [smem:[#allocation31_spill]] %s3594_s5 }
   0x7   :  { %3627 = sst [smem:[#allocation32_spill]] %s3595_s6 }
   0x8   :  { %3628 = sst [smem:[#allocation33_spill]] %s3597_s8 }
   0x9   :  { %3629 = sst [smem:[#allocation34_spill]] %s3599_s10 }
   0xa   :  { %3630 = sst [smem:[#allocation35_spill]] %s3601_s12 }
   0xb   :  { %3631 = sst [smem:[#allocation36_spill]] %s3605_s16 }
   0xc   :  { %3632 = sst [smem:[#allocation37_spill]] %s3606_s17 }
   0xd   :  { %3633 = sst [smem:[#allocation38_spill]] %s3607_s18 }
   0xe   :  { %3634 = sst [smem:[#allocation39_spill]] %s3608_s19 }
   0xf   :  { %3635 = sst [smem:[#allocation40_spill]] %s3609_s20 }
  0x10   :  { %3636 = sst [smem:[#allocation41_spill]] %s3610_s21 }
  0x11   :  { %3637 = sst [smem:[#allocation42_spill]] %s3611_s22 }
  0x12   :  { %27 = vsyncpa [#allocation3], 0 }
  0x13   :  { %28 = vsyncpa [#allocation6], 0 }
  0x14   :  { %30 = vsyncpa [#allocation6 + $0x1], 0 }
  0x15   :  { %31 = vsyncpa [#allocation9], 0 }
  0x16   :  { %32 = vsyncpa [#allocation12], 0 }
  0x17   :  { %33 = vsyncpa [#allocation15], 0 }
  0x18   :  { %34 = vsyncpa [#allocation4], 0 }
  0x19   :  { %36 = vsyncpa [#allocation4 + $0x1], 0  ;;  %s3133_s3 = smov 0   ;;  %s3135_s28 = smov 0  }
  0x1a   :  { %s3137_s29 = smov 0   ;;  %s3139_s30 = smov 0  }
  0x1b LB: > { %3638 = sst [smem:[#allocation24_spill]] %s2997_s29  ;;  %s3157_s5 = sadd.s32 4294967295, %s3001_s30   ;;  %s3001_s30 = sphi %s3139_s30, %s3672_s30   ;;  %s2997_s29 = sphi %s3137_s29, %s3671_s29   ;;  %s2993_s28 = sphi %s3135_s28, %s3670_s28   ;;  %s2989_s3 = sphi %s3133_s3, %s3669_s3  }
  0x1c   : > { %s3639_s23 = sld [smem:[#allocation32_spill]]  ;;  %p2429_p0 = scmp.ge.s32.totalorder %s3001_s30, 1 }
  0x1d   : > { %p136_p1 = scmp.eq.s32.totalorder %s3157_s5, 0  ;;  %p550_p2 = scmp.lt.s32.totalorder %s3001_s30, 3 }
  0x1e   : > { %s3003_s6 = smov [#allocation7]   ;;  %s3641_s8 = sld [smem:[#allocation33_spill]] }
  0x1f   : > { %p3162_p3 = pnand %p2429_p0, %p550_p2  ;;  %s581_s25 = sshll.u32 %s3003_s6, 4  ;;  %s582_s25 = int_to_ptr.vmem [resolvable:$true] %s581_s25 }
  0x20   : > { %s3643_s12 = sld [smem:[#allocation35_spill]]  ;;  %s3004_s22 = smov [#allocation8]  }
  0x21   : > { %p2518_p4 = pneg %p3162_p3  ;;  %s598_s21 = sshll.u32 %s3004_s22, 4  ;;  %s599_s21 = int_to_ptr.vmem [resolvable:$true] %s598_s21 }
  0x22   : > { %s579_s1 = sshll.u32 %s3639_s23, 4  ;;  %s3618_s20 = smov 128   ;;  %s580_s1 = int_to_ptr.hbm [resolvable:$true] %s579_s1 }
  0x23   : > { %p3174_p6 = pnand %p2518_p4, %p136_p1  ;;  %s3619_s19 = smov 8  }
  0x24   : > { %s596_s27 = sshll.u32 %s3641_s8, 4  ;;  %s3644_s0 = sld [smem:[#allocation28_spill]]  ;;  %s597_s27 = int_to_ptr.hbm [resolvable:$true] %s596_s27 }
  0x25   : > { %2524 = dma.hbm_to_vmem [thread:$0]  (!%p3174_p6), %s580_s1, 1024, %s582_s25, [#allocation6], %s3618_s20, %s3618_s20, %s3619_s19  }
  0x26   : > { %s630_s6 = sshll.u32 %s3643_s12, 4  ;;  %s3007_s22 = smov [#allocation11]   ;;  %s631_s6 = int_to_ptr.hbm [resolvable:$true] %s630_s6 }
  0x27   : > { %2527 = dma.hbm_to_vmem [thread:$0]  (!%p3174_p6), %s597_s27, 1024, %s599_s21, [#allocation9], %s3618_s20, %s3618_s20, %s3619_s19  }
  0x28   : > { %s632_s8 = sshll.u32 %s3007_s22, 4  ;;  %s3008_s1 = smov [#allocation2]   ;;  %s633_s8 = int_to_ptr.vmem [resolvable:$true] %s632_s8 }
  0x29   : > { %2533 = dma.hbm_to_vmem [thread:$0]  (!%p3174_p6), %s631_s6, 1024, %s633_s8, [#allocation12], %s3618_s20, %s3618_s20, %s3619_s19  }
  0x2a   : > { %s562_s23 = sshll.u32 %s3644_s0, 4  ;;  %s564_s25 = sshll.u32 %s3008_s1, 4  ;;  %s563_s23 = int_to_ptr.hbm [resolvable:$true] %s562_s23  ;;  %s565_s25 = int_to_ptr.vmem [resolvable:$true] %s564_s25 }
  0x2b   : > { %s3645_s10 = sld [smem:[#allocation34_spill]]  ;;  %s3009_s0 = smov [#allocation10]  }
  0x2c   : > { %2521 = dma.hbm_to_vmem [thread:$0]  (!%p3174_p6), %s563_s23, 128, %s565_s25, [#allocation3]  }
  0x2d   : > { %s3646_s16 = sld [smem:[#allocation36_spill]]  ;;  %s615_s8 = sshll.u32 %s3009_s0, 4  ;;  %s616_s8 = int_to_ptr.vmem [resolvable:$true] %s615_s8 }
  0x2e   : > { %s3010_s12 = smov [#allocation13]   ;;  %s3647_s18 = sld [smem:[#allocation38_spill]] }
  0x2f   : > { %s655_s17 = sshll.u32 %s3010_s12, 4  ;;  %s3011_s1 = smov [#allocation14]   ;;  %s656_s17 = int_to_ptr.vmem [resolvable:$true] %s655_s17 }
  0x30   : > { %s672_s25 = sshll.u32 %s3011_s1, 4  ;;  %s3227_s27 = sadd.s32 1, %s3001_s30   ;;  %s673_s25 = int_to_ptr.vmem [resolvable:$true] %s672_s25 }
  0x31   : > { %s613_s21 = sshll.u32 %s3645_s10, 4  ;;  %s122_s26 = sadd.s32 1, %s2997_s29  ;;  %s614_s21 = int_to_ptr.hbm [resolvable:$true] %s613_s21 }
  0x32   : > { %2530 = dma.hbm_to_vmem [thread:$0]  (!%p3174_p6), %s614_s21, 1024, %s616_s8, [#allocation9], %s3618_s20, %s3618_s20, %s3619_s19  }
  0x33   : > { %s653_s2 = sshll.u32 %s3646_s16, 4  ;;  %s2428_s21 = sadd.s32 4294967294, %s3001_s30   ;;  %s654_s2 = int_to_ptr.hbm [resolvable:$true] %s653_s2 }
  0x34   : > { %s670_s22 = sshll.u32 %s3647_s18, 4  ;;  %s119_s0 = ssub.s32 %s3001_s30, %s3227_s27  ;;  %s671_s22 = int_to_ptr.hbm [resolvable:$true] %s670_s22 }
  0x35   : > { %2536 = dma.hbm_to_vmem [thread:$0]  (!%p3174_p6), %s654_s2, 1024, %s656_s17, [#allocation12], %s3618_s20, %s3618_s20, %s3619_s19  }
  0x36   : > { %2539 = dma.hbm_to_vmem [thread:$0]  (!%p3174_p6), %s671_s22, 1024, %s673_s25, [#allocation15], %s3618_s20, %s3618_s20, %s3619_s19  }
  0x37   : > { %p129_p7 = scmp.ne.s32.totalorder %s2997_s29, %s2993_s28  ;;  %p120_p8 = scmp.eq.s32.totalorder %s119_s0, 0 }
  0x38   : > { %p130_p9 = scmp.eq.s32.totalorder %s3001_s30, 0  ;;  %p135_p10 = scmp.ne.s32.totalorder %s2993_s28, %s2989_s3 }
  0x39   : > { %p537_p11 = scmp.eq.s32.totalorder %s3157_s5, 1  ;;  %p543_p2 = scmp.eq.s32.totalorder %s2428_s21, 1 }
  0x3a   : > { %s3239_s4 = scalar_select %p120_p8, %s2997_s29, %s122_s26  }
  0x3b   : > { %p3241_p12 = por %p130_p9, %p129_p7  ;;  %p3247_p13 = por %p136_p1, %p135_p10 }
  0x3c   : > { %3648 = sst [smem:[#allocation25_spill]] %s3239_s4  ;;  %p3251_p0 = por %p537_p11, %p129_p7 }
  0x3d   : > { %p2555_p4 = scmp.lt.s32.totalorder %s3001_s30, 2  ;;  %s709_s17 = sand.u32 1, %s3001_s30  }
  0x3e   : > { %p3257_p6 = por %p543_p2, %p135_p10  ;;  %s711_s23 = sand.u32 1, %s2997_s29  }
  0x3f   : > { %s2485_s22 = sshll.u32 %s3001_s30, 4  ;;  %s2438_s1 = sshll.u32 %s711_s23, 4 }
  0x40   : > { %s3653_s0 = sld [smem:[#allocation29_spill]]  ;;  %s713_s10 = scalar_lea.vmem [#allocation5], %s2438_s1 }
  0x41   : > { %s721_s16 = sshll.u32 %s713_s10, 4  ;;  %p3268_p7 = pnand %p2555_p4, %p3241_p12  ;;  %s722_s16 = int_to_ptr.vmem [resolvable:$true] %s721_s16 }
  0x42   : > { %s710_s18 = scalar_lea.sflag [#allocation6], %s709_s17 }
  0x43   : > { %p2889_p9 = pneg %p3268_p7 }
  0x46   : > { %s718_s20 = scalar_lea.hbm %s3653_s0, %s2485_s22  ;;  %s2892_s10 = scalar_lea.hbm %s3653_s0, 32 }
  0x47   : > { %s719_s19 = sshll.u32 %s718_s20, 4  ;;  %s720_s19 = int_to_ptr.hbm [resolvable:$true] %s719_s19 }
  0x48   : > { %s2885_s4 = sshra.s32 %s720_s19, 4  ;;  %s2886_s4 = int_to_ptr.hbm [resolvable:$true] %s2885_s4 }
  0x49   : > { %s2887_s29 = scalar_lea.hbm %s2886_s4, 16  ;;  %p2893_p12 = scmp.lt.s32.totalorder %s2886_s4, %s3653_s0 }
  0x4a   : > { %p2888_p8 = scmp.ne.s32.totalorder %s2886_s4, %s2887_s29  ;;  %p2894_p2 = scmp.lt.s32.totalorder %s2892_s10, %s2887_s29 }
  0x4c   : > { %p2890_p10 = pnand %p2889_p9, %p2888_p8  ;;  %p2895_p4 = por %p2894_p2, %p2893_p12 }
  0x4e   : > { %p2891_p11 = pneg %p2890_p10 }
  0x50   : > { %p2896_p5 = pnand %p2895_p4, %p2891_p11 }
  0x52   : > { %2899 = shalt.err (!%p2896_p5)
}
  0x53   : > { %s3655_s17 = smov 8   ;;  %s3656_s1 = smov 128  }
  0x54   : > { %2543 = dma.hbm_to_vmem [thread:$0]  (!%p3268_p7), %s720_s19, 256, %s722_s16, %s710_s18, %s3656_s1, %s3656_s1, %s3655_s17  }
  0x55   : > { %733 = sbr.rel (%p3162_p3) target bundleno = 5020 (0x139c), region = 108 }
  0x5a   : > { %2960 = dma.done.wait (%p136_p1), [#allocation3], 128  }
  0x5b   : > { %2962 = vsyncadd (%p136_p1), [#allocation3], 4294967168  ;;  %s740_s29 = sand.u32 1, %s3157_s5   ;;  %s3293_s4 = sand.u32 1, %s2993_s28  }
  0x5c   : > { %s2443_s25 = sshll.u32 %s3293_s4, 4  ;;  %s741_s26 = scalar_lea.sflag [#allocation6], %s740_s29 }
  0x5d   : > { %s3296_s21 = scalar_lea.vmem [#allocation5], %s2443_s25 }
  0x5e   : > { %2964 = dma.done.wait (%p3247_p13), %s741_s26, 256  }
  0x5f   : > { %2966 = vsyncadd (%p3247_p13), %s741_s26, 4294967040 }
  0x60   : > { %2968 = dma.done.wait (%p136_p1), [#allocation6], 1024  }
  0x61   : > { %2970 = vsyncadd (%p136_p1), [#allocation6], 4294966272 }
  0x62   : > { %2972 = dma.done.wait (%p136_p1), [#allocation9], 2048  }
  0x63   : > { %2974 = vsyncadd (%p136_p1), [#allocation9], 4294965248 }
  0x64   : > { %2976 = dma.done.wait (%p136_p1), [#allocation12], 2048  }
  0x65   : > { %2978 = vsyncadd (%p136_p1), [#allocation12], 4294965248 }
  0x66   : > { %2980 = dma.done.wait (%p136_p1), [#allocation15], 1024  }
  0x67   : > { %2982 = vsyncadd (%p136_p1), [#allocation15], 4294966272  ;;  %p844_p3 = scmp.lt.s32.totalorder %s3157_s5, 1  ;;  %v3012_v0 = vmov 0   ;;  %s3657_s8 = sld [smem:[#allocation27_spill]]  ;;  %v929_v2 = vld [vmem:[#allocation8 + $0x18] sm:$0xff] }
  0x68   : > { %2612 = vset.pattern.permute.xlu0 %v3012_v0  ;;  %v958_v3 = vld [vmem:[#allocation10 + $0x18] sm:$0xff]  ;;  %947 = vmatpush.msra.mxu1 %v929_v2  ;;  %v928_v4 = vld [vmem:[#allocation8 + $0x10] sm:$0xff]  ;;  %v927_v6 = vld [vmem:[#allocation8 + $0x8] sm:$0xff]  ;;  %s3658_s22 = sld [smem:[#allocation26_spill]]  ;;  %vm863_vm0 = vcmask 261120   ;;  %v3013_v14 = vmov 32.0  }
  0x69   : > { %s845_s16 = scalar_select %p844_p3, %s3157_s5, 1  ;;  %v957_v5 = vld [vmem:[#allocation10 + $0x10] sm:$0xff]  ;;  %973 = vmatpush.msra.mxu2 %v958_v3  ;;  %v956_v7 = vld [vmem:[#allocation10 + $0x8] sm:$0xff]  ;;  %v926_v8 = vld [vmem:[#allocation8] sm:$0xff]  ;;  %2647 = vrcp.f32 %v3013_v14  ;;  %vm1056_vm5 = vcmask 130048   ;;  %vm1101_vm6 = vcmask 64512  }
  0x6a   : > { %948 = vmatpush.msra.mxu1 %v928_v4  ;;  %v955_v9 = vld [vmem:[#allocation10] sm:$0xff]  ;;  %v2625_v26 = vld [vmem:[%s3598_s9] ss:$0 sm:$0xff]  ;;  %s3014_s29 = smov 112   ;;  %v899_v30 = vld [vmem:[#allocation7 + $0x10] sm:$0xff]  ;;  %s3660_s24 = sld [smem:[#allocation31_spill]] }
  0x6b   : > { %s2451_s18 = sshll.u32 %s845_s16, 3  ;;  %974 = vmatpush.msra.mxu2 %v957_v5  ;;  %v900_v29 = vld [vmem:[#allocation7 + $0x18] sm:$0xff]  ;;  %v898_v31 = vld [vmem:[#allocation7 + $0x8] sm:$0xff]  ;;  %v897_v32 = vld [vmem:[#allocation7] sm:$0xff]  ;;  %s3659_s16 = sld [smem:[#allocation30_spill]]  ;;  %vm1317_vm7 = vcmask 1047556  }
  0x6c   : > { %949 = vmatpush.msra.mxu1 %v927_v6  ;;  %918 = vmatpush.msra.mxu0 %v900_v29  ;;  %v2629_v49 = vld [vmem:[%s3596_s7] ss:$0 sm:$0xff]  ;;  %s3663_s1 = sld [smem:[#allocation40_spill]]  ;;  %s2482_s19 = sshll.u32 %s3157_s5, 1 }
  0x6d   : > { %s851_s20 = scalar_lea.vmem %s3657_s8, %s2451_s18  ;;  %975 = vmatpush.msra.mxu2 %v956_v7  ;;  %v3357_v57 = vld [vmem:[#allocation2] sm:$0xff]  ;;  %s3664_s26 = sld [smem:[#allocation41_spill]] }
  0x6e   : > { %v852_v1 = vld [vmem:[%s851_s20] sm:$0xff]  ;;  %950 = vmatpush.msra.mxu1 %v926_v8  ;;  %s847_s2 = scalar_lea.vmem %s3658_s22, %s2451_s18  ;;  %919 = vmatpush.msra.mxu0 %v899_v30  ;;  %v3015_v30 = vmov 1983009808   ;;  %s3017_s22 = smov 16  }
  0x6f   : > { %856 = vperm.xlu0 %2612, %v852_v1   ;;  %976 = vmatpush.msra.mxu2 %v955_v9  ;;  %v853_v10 = vld [vmem:[%s847_s2] sm:$0xff]  ;;  %v2648_v15 = vpop.eup %2647  ;;  %s3661_s20 = sld [smem:[#allocation37_spill]]  ;;  %s2450_s18 = sshll.u32 %s3293_s4, 1 }
  0x70   : > { %v868_v16 = vmul.f32 32.0, %v2648_v15  ;;  %vm872_vm1 = vweird.f32 %v2648_v15  ;;  %920 = vmatpush.msra.mxu0 %v898_v31  ;;  %v2628_v45 = vld [vmem:[%s3660_s24] ss:$0 sm:$0xff]  ;;  %v1320_v31 = vunpack.c.l.s4 %v3015_v30  ;;  %s3662_s2 = sld [smem:[#allocation39_spill]]  ;;  %s2250_s5 = scalar_lea.sflag [#allocation4], %s3293_s4 }
  0x71   : > { %v2627_v42 = vld [vmem:[%s3659_s16] ss:$0 sm:$0xff]  ;;  %s3665_s10 = sld [smem:[#allocation42_spill]] }
  0x72   : > { %v869_v17 = vsub.f32 1.0, %v868_v16  ;;  %921 = vmatpush.msra.mxu0 %v897_v32  ;;  %v2626_v0 = vld [vmem:[%s3600_s11] ss:$0 sm:$0xff] }
  0x74   : > { %v870_v18 = vmul.f32 %v2648_v15, %v869_v17 }
  0x76   : > { %v871_v19 = vadd.f32 %v2648_v15, %v870_v18 }
  0x77   : > { %s2260_s17 = scalar_lea.hbm %s3665_s10, %s2482_s19  ;;  %s2935_s19 = scalar_lea.hbm %s3665_s10, 4 }
  0x78   : > { %v3332_v20 = vsel %vm872_vm1, %v2648_v15, %v871_v19 }
  0xe1   : > { %v3326_v11 = vpop.permute.xlu0 %856 }
  0xe2   : > { %v859_v12 = vmul.f32 %v3326_v11, %v853_v10 }
  0xe4   : > { %2454 = vmatmul.msk.f32.vlgmr.msra.gmra.mxu1 %vm863_vm0, %v859_v12  ;;  %2455 = vmatmul.msk.f32.vlgmr.msra.gmra.mxu2 %vm863_vm0, %v859_v12  ;;  %v864_v13 = vsel %vm863_vm0, %v859_v12, 0.0 }
  0xe5   : > { %865 = vadd.xlane.f32.xlu0 %v864_v13 }
 0x158   : > { %v866_v21 = vpop.xlane.xlu0 %865 }
 0x159   : > { %v874_v22 = vmul.f32 %v3332_v20, %v866_v21 }
 0x15b   : > { %v875_v23 = vsub.f32 %v859_v12, %v874_v22 }
 0x15d   : > { %v876_v24 = vmul.f32 %v875_v23, %v875_v23 }
 0x15f   : > { %v877_v25 = vsel %vm863_vm0, %v876_v24, 0.0 }
 0x160   : > { %878 = vadd.xlane.f32.xlu1 %v877_v25 }
 0x161   : > { %v952_v27 = vpop.f32.mrf.mxu1 }
 0x162   : > { %v953_v28 = vadd.f32 %v2625_v26, %v952_v27 }
 0x167   : > { %v978_v1 = vpop.f32.mrf.mxu2 }
 0x168   : > { %v979_v2 = vadd.f32 %v2626_v0, %v978_v1 }
 0x179   : > { %985 = vrot.lane.b32.xlu1 %v953_v28, %s3014_s29 }
 0x1d3   : > { %v879_v33 = vpop.xlane.xlu1 %878 }
 0x1d4   : > { %v880_v34 = vmul.f32 %v879_v33, %v3332_v20  ;;  %v3375_v33 = vunpack.c.0.s8 %v1320_v31 }
 0x1d6   : > { %v881_v35 = vadd.f32 1e-08, %v880_v34 }
 0x1d8   : > { %2649 = vrsqrt.f32 %v881_v35  ;;  %vm888_vm3 = vweird.f32 %v881_v35 }
 0x1de   : > { %v2650_v36 = vpop.eup %2649 }
 0x1df   : > { %v883_v37 = vmul.f32 %v2650_v36, %v881_v35  ;;  %vm889_vm2 = vweird.f32 %v2650_v36  ;;  %v1415_v35 = vld [vmem:[#allocation11 + $0x18] sm:$0xff] }
 0x1e0   : > { %vm890_vm4 = vmor %vm888_vm3, %vm889_vm2  ;;  %1433 = vmatpush.msrb.mxu2 %v1415_v35 }
 0x1e1   : > { %v884_v38 = vmul.f32 %v2650_v36, %v883_v37  ;;  %v1413_v37 = vld [vmem:[#allocation11 + $0x8] sm:$0xff] }
 0x1e3   : > { %v885_v39 = vmul.f32 0.5, %v884_v38 }
 0x1e5   : > { %v886_v40 = vsub.f32 1.5, %v885_v39 }
 0x1e7   : > { %v887_v41 = vmul.f32 %v2650_v36, %v886_v40  ;;  %v3016_v40 = vmov 1934713408  }
 0x1e9   : > { %v891_v43 = vsel %vm890_vm4, %v2650_v36, %v887_v41  ;;  %v1414_v36 = vld [vmem:[#allocation11 + $0x10] sm:$0xff]  ;;  %v1342_v41 = vunpack.c.l.s4 %v3016_v40 }
 0x1ea   : > { %v892_v44 = vmul.f32 %v891_v43, %v875_v23  ;;  %1434 = vmatpush.msrb.mxu2 %v1414_v36 }
 0x1eb   : > { %v986_v46 = vpop.permute.xlu1 %985 }
 0x1ec   : > { %1024 = vxpose.xlu1.b32.start.end [1/1] (short) (narrow) %v986_v46, 16  ;;  %v894_v47 = vmul.f32 %v2627_v42, %v892_v44  ;;  %1435 = vmatpush.msrb.mxu2 %v1413_v37  ;;  %v3380_v44 = vunpack.c.0.s8 %v1342_v41 }
 0x1ee   : > { %v3347_v48 = vadd.f32 %v2628_v45, %v894_v47 }
 0x1f0   : > { %2453 = vmatmul.msk.f32.vlgmr.msra.gmra.mxu0 %vm863_vm0, %v3347_v48 }
 0x26d   : > { %v923_v50 = vpop.f32.mrf.mxu0 }
 0x26e   : > { %v924_v51 = vadd.f32 %v2629_v49, %v923_v50 }
 0x270   : > { %982 = vrot.lane.b32.xlu2 %v924_v51, %s3014_s29 }
 0x290   : > { %v1040_v54 = vpop.trf.xlu1 }
 0x296   : > { %992 = vxpose.xlu2.b32.start.end [1/1] (short) (narrow) %v953_v28, 16 }
 0x298   : > { %v1041_v56 = vpop.trf.xlu1 }
 0x2ca   : > { %v983_v52 = vpop.permute.xlu2 %982 }
 0x32f   : > { %v1008_v53 = vpop.trf.xlu2 }
 0x337   : > { %v1009_v55 = vpop.trf.xlu2 }
 0x338   : > { %1073 = vmatpush.msra.mxu3 %v1009_v55 }
 0x33a   : > { %1074 = vmatpush.msra.mxu3 %v1008_v53 }
 0x33b   : > { %2456 = vmatmul.msk.f32.vlgmr.msra.gmra.mxu3 %vm1056_vm5, %v924_v51 }
 0x33c   : > { %1095 = vmatpush.msrb.mxu3 %v1041_v56 }
 0x33e   : > { %1096 = vmatpush.msrb.mxu3 %v1040_v54 }
 0x343   : > { %2457 = vmatmul.msk.f32.vlgmr.msrb.gmra.mxu3 %vm1056_vm5, %v983_v52 }
 0x3be   : > { %v1076_v58 = vpop.f32.mrf.mxu3 }
 0x3bf   : > { %v1077_v59 = vadd.f32 %v1076_v58, %v3357_v57 }
 0x3c1   : > { %v1102_v60 = vsel %vm1101_vm6, %v1077_v59, -inf }
 0x3c2   : > { %1103 = vmax.xlane.f32.xlu2 %v1102_v60 }
 0x3c6   : > { %v1098_v61 = vpop.f32.mrf.mxu3 }
 0x3c7   : > { %v1099_v62 = vadd.f32 %v1098_v61, %v3357_v57 }
 0x3c9   : > { %v1105_v63 = vsel %vm1101_vm6, %v1099_v62, -inf }
 0x3ca   : > { %1106 = vmax.xlane.f32.xlu0 %v1105_v63 }
 0x3de   : > { %989 = vrot.lane.b32.xlu0 %v979_v2, %s3014_s29 }
 0x435   : > { %v1104_v3 = vpop.xlane.xlu2 %1103 }
 0x436   : > { %v1108_v4 = vsub.f32 %v1077_v59, %v1104_v3 }
 0x438   : > { %v1110_v5 = vmul.f32 1.442695, %v1108_v4 }
 0x43a   : > { %2651 = vpow2.f32 %v1110_v5 }
 0x43d   : > { %v1107_v6 = vpop.xlane.xlu0 %1106 }
 0x43e   : > { %v1109_v7 = vsub.f32 %v1099_v62, %v1107_v6 }
 0x440   : > { %v2652_v8 = vpop.eup %2651  ;;  %v1112_v9 = vmul.f32 1.442695, %v1109_v7 }
 0x441   : > { %v1114_v10 = vsel %vm1101_vm6, %v2652_v8, 0.0 }
 0x442   : > { %2653 = vpow2.f32 %v1112_v9  ;;  %1115 = vadd.xlane.f32.xlu0 %v1114_v10 }
 0x448   : > { %v2654_v12 = vpop.eup %2653 }
 0x449   : > { %v1117_v13 = vsel %vm1101_vm6, %v2654_v12, 0.0 }
 0x44a   : > { %1118 = vadd.xlane.f32.xlu1 %v1117_v13 }
 0x450   : > { %v990_v14 = vpop.permute.xlu0 %989 }
 0x46b   : > { %1124 = vxpose.xlu0.b32.start.end [1/1] (short) (narrow) %v979_v2, 16 }
 0x47b   : > { %1156 = vxpose.xlu0.b32.start.end [1/1] (short) (narrow) %v990_v14, 16 }
 0x4b5   : > { %v1116_v15 = vpop.xlane.xlu0 %1115 }
 0x4b6   : > { %2655 = vrcp.f32 %v1116_v15 }
 0x4bc   : > { %v2656_v16 = vpop.eup %2655 }
 0x4bd   : > { %v1119_v17 = vpop.xlane.xlu1 %1118  ;;  %v1122_v18 = vmul.f32 %v2656_v16, %v2652_v8 }
 0x4be   : > { %2657 = vrcp.f32 %v1119_v17 }
 0x4bf   : > { %2458 = vmatpush.xpose.msk.msrb.mxu0 %vm1101_vm6, %v1122_v18 }
 0x4c4   : > { %v2658_v19 = vpop.eup %2657 }
 0x4c5   : > { %v1123_v21 = vmul.f32 %v2658_v19, %v2654_v12 }
 0x4c7   : > { %2461 = vmatpush.xpose.msk.msrb.mxu1 %vm1101_vm6, %v1123_v21 }
 0x50f   : > { %v1140_v22 = vpop.trf.xlu0 }
 0x510   : > { %2459 = vmatmul.msk.f32.vlgmr.msrb.gmra.mxu0 %vm1101_vm6, %v1140_v22 }
 0x517   : > { %v1141_v23 = vpop.trf.xlu0 }
 0x518   : > { %2460 = vmatmul.msk.f32.gmra.mxu0 %vm1101_vm6, %v1141_v23 }
 0x51f   : > { %v1172_v24 = vpop.trf.xlu0 }
 0x520   : > { %2462 = vmatmul.msk.f32.vlgmr.msrb.gmra.mxu1 %vm1101_vm6, %v1172_v24 }
 0x527   : > { %v1173_v25 = vpop.trf.xlu0 }
 0x528   : > { %2463 = vmatmul.msk.f32.gmra.mxu1 %vm1101_vm6, %v1173_v25 }
 0x58d   : > { %v1214_v26 = vpop.f32.mrf.mxu0 }
 0x58e   : > { %1252 = vxpose.xlu2.b32.start [1/2] (short) (narrow) %v1214_v26, 8 }
 0x595   : > { %v1217_v27 = vpop.f32.mrf.mxu0 }
 0x596   : > { %1253 = vxpose.xlu2.b32.end [2/2] (short) (narrow) %v1217_v27, 8 }
 0x59d   : > { %v1246_v28 = vpop.f32.mrf.mxu1 }
 0x59e   : > { %1284 = vxpose.xlu0.b32.start [1/2] (short) (narrow) %v1246_v28, 8 }
 0x5a5   : > { %v1249_v29 = vpop.f32.mrf.mxu1 }
 0x5a6   : > { %1285 = vxpose.xlu0.b32.end [2/2] (short) (narrow) %v1249_v29, 8  ;;  %v1412_v29 = vld [vmem:[#allocation11] sm:$0xff] }
 0x5a7   : > { %1436 = vmatpush.msrb.mxu2 %v1412_v29 }
 0x627   : > { %v1268_v32 = vpop.trf.xlu2 }
 0x628   : > { %v1316_v34 = vrot.slane %v1268_v32, 4  ;;  %v1322_v39 = vperm.slane %v1268_v32, %v3375_v33  ;;  %v2630_v32 = vld [vmem:[%s3602_s13] ss:$0 sm:$0xff] }
 0x62a   : > { %v1318_v38 = vsel %vm1317_vm7, 0.0, %v1316_v34  ;;  %v1339_v43 = vrot.slane %v1322_v39, 4 }
 0x62b   : > { %v1326_v42 = vperm.slane %v1318_v38, %v3375_v33 }
 0x62d   : > { %v1351_v49 = vrot.slane %v1326_v42, 4 }
 0x642   : > { %v1300_v45 = vpop.trf.xlu0 }
 0x643   : > { %v1327_v46 = vrot.slane %v1300_v45, 4  ;;  %v1332_v47 = vperm.slane %v1300_v45, %v3375_v33  ;;  %v1472_v45 = vld [vmem:[#allocation13 + $0x10] sm:$0xff] }
 0x645   : > { %v1328_v50 = vsel %vm1317_vm7, 0.0, %v1327_v46  ;;  %v1337_v51 = vrot.slane %v1332_v47, 4  ;;  %v1340_v52 = vsel %vm1317_vm7, %v1332_v47, %v1339_v43  ;;  %v1473_v43 = vld [vmem:[#allocation13 + $0x18] sm:$0xff]  ;;  %v1471_v46 = vld [vmem:[#allocation13 + $0x8] sm:$0xff]  ;;  %v1470_v47 = vld [vmem:[#allocation13] sm:$0xff] }
 0x646   : > { %v1336_v53 = vperm.slane %v1328_v50, %v3375_v33  ;;  %v1348_v54 = vperm.slane %v1340_v52, %v3380_v44  ;;  %1491 = vmatpush.msra.mxu3 %v1473_v43 }
 0x647   : > { %v1338_v55 = vsel %vm1317_vm7, %v1337_v51, %v1322_v39 }
 0x648   : > { %v1344_v56 = vperm.slane %v1338_v55, %v3380_v44  ;;  %v1349_v58 = vrot.slane %v1336_v53, 4  ;;  %v1352_v59 = vsel %vm1317_vm7, %v1336_v53, %v1351_v49  ;;  %v1363_v60 = vrot.slane %v1348_v54, 4  ;;  %1492 = vmatpush.msra.mxu3 %v1472_v45 }
 0x649   : > { %v1360_v61 = vperm.slane %v1352_v59, %v3380_v44  ;;  %v2631_v59 = vld [vmem:[%s3603_s14] ss:$0 sm:$0xff] }
 0x64a   : > { %v1350_v62 = vsel %vm1317_vm7, %v1349_v58, %v1326_v42  ;;  %v1361_v63 = vrot.slane %v1344_v56, 4  ;;  %v1364_v0 = vsel %vm1317_vm7, 0.0, %v1363_v60  ;;  %v1369_v7 = vsel %vm1317_vm7, %v1363_v60, %v1344_v56  ;;  %1493 = vmatpush.msra.mxu3 %v1471_v46 }
 0x64b   : > { %v1356_v1 = vperm.slane %v1350_v62, %v3380_v44  ;;  %v1367_v2 = vrot.slane %v1360_v61, 4  ;;  %v1374_v3 = vrot.slane %v1364_v0, 4  ;;  %v1373_v13 = vperm.slane %v1369_v7, %v3375_v33  ;;  %v2632_v62 = vld [vmem:[%s3604_s15] ss:$0 sm:$0xff] }
 0x64c   : > { %v1362_v4 = vsel %vm1317_vm7, 0.0, %v1361_v63  ;;  %1494 = vmatpush.msra.mxu3 %v1470_v47 }
 0x64d   : > { %v1365_v5 = vrot.slane %v1356_v1, 4  ;;  %v1368_v6 = vsel %vm1317_vm7, 0.0, %v1367_v2  ;;  %v1375_v8 = vsel %vm1317_vm7, %v1374_v3, %v1362_v4  ;;  %v1380_v14 = vsel %vm1317_vm7, %v1367_v2, %v1356_v1  ;;  %v1502_v1 = vld [vmem:[#allocation14 + $0x10] sm:$0xff]  ;;  %v1501_v2 = vld [vmem:[#allocation14 + $0x8] sm:$0xff]  ;;  %v1500_v3 = vld [vmem:[#allocation14] sm:$0xff] }
 0x64e   : > { %v1385_v9 = vrot.slane %v1368_v6, 4  ;;  %v1379_v10 = vperm.slane %v1375_v8, %v3375_v33  ;;  %v1384_v19 = vperm.slane %v1380_v14, %v3375_v33  ;;  %v2633_v4 = vld [vmem:[%s3661_s20] ss:$0 sm:$0xff]  ;;  %v1621_v14 = vld [vmem:[#allocation10 + $0x28] sm:$0xff] }
 0x64f   : > { %v1366_v12 = vsel %vm1317_vm7, 0.0, %v1365_v5  ;;  %v1593_v8 = vld [vmem:[#allocation8 + $0x38] sm:$0xff] }
 0x650   : > { %v1386_v15 = vsel %vm1317_vm7, %v1385_v9, %v1366_v12  ;;  %v1391_v16 = vrot.slane %v1379_v10, 4  ;;  %v1623_v9 = vld [vmem:[#allocation10 + $0x38] sm:$0xff]  ;;  %1611 = vmatpush.msra.mxu0 %v1593_v8  ;;  %v1592_v10 = vld [vmem:[#allocation8 + $0x30] sm:$0xff] }
 0x651   : > { %v1390_v17 = vperm.slane %v1386_v15, %v3375_v33  ;;  %1638 = vmatpush.msra.mxu1 %v1623_v9  ;;  %v1622_v12 = vld [vmem:[#allocation10 + $0x30] sm:$0xff]  ;;  %v1590_v15 = vld [vmem:[#allocation8 + $0x20] sm:$0xff] }
 0x652   : > { %v1392_v18 = vsel %vm1317_vm7, %v1391_v16, %v1373_v13  ;;  %1612 = vmatpush.msra.mxu0 %v1592_v10  ;;  %v1591_v13 = vld [vmem:[#allocation8 + $0x28] sm:$0xff]  ;;  %v1620_v16 = vld [vmem:[#allocation10 + $0x20] sm:$0xff] }
 0x653   : > { %v1396_v21 = vperm.slane %v1392_v18, %v3380_v44  ;;  %v1397_v22 = vrot.slane %v1390_v17, 4  ;;  %1639 = vmatpush.msra.mxu1 %v1622_v12  ;;  %v2634_v17 = vld [vmem:[%s3662_s2] ss:$0 sm:$0xff] }
 0x654   : > { %1613 = vmatpush.msra.mxu0 %v1591_v13 }
 0x655   : > { %v1398_v23 = vsel %vm1317_vm7, %v1397_v22, %v1384_v19  ;;  %v1405_v24 = vrot.slane %v1396_v21, 4  ;;  %1640 = vmatpush.msra.mxu1 %v1621_v14 }
 0x656   : > { %v1402_v25 = vperm.slane %v1398_v23, %v3380_v44  ;;  %1614 = vmatpush.msra.mxu0 %v1590_v15 }
 0x657   : > { %1641 = vmatpush.msra.mxu1 %v1620_v16 }
 0x658   : > { %v1406_v26 = vsel %vm1317_vm7, %v1402_v25, %v1405_v24  ;;  %v1403_v27 = vrot.slane %v1402_v25, 4 }
 0x659   : > { %1408 = vrot.lane.b32.xlu1 %v1406_v26, %s3017_s22 }
 0x65a   : > { %v1404_v28 = vsel %vm1317_vm7, %v1403_v27, %v1396_v21 }
 0x6cb   : > { %v1409_v30 = vpop.permute.xlu1 %1408 }
 0x6cc   : > { %v1411_v31 = vsel %vm1056_vm5, %v1404_v28, %v1409_v30  ;;  %v2636_v28 = vld [vmem:[%s3600_s11 + $0x1] ss:$0 sm:$0xff] }
 0x6cd   : > { %2464 = vmatmul.msk.f32.vlgmr.msrb.gmra.mxu2 %vm863_vm0, %v1411_v31 }
 0x750   : > { %v1438_v34 = vpop.f32.mrf.mxu2 }
 0x751   : > { %v1439_v35 = vadd.f32 %v2630_v32, %v1438_v34  ;;  %v2635_v32 = vld [vmem:[%s3598_s9 + $0x1] ss:$0 sm:$0xff] }
 0x753   : > { %v1441_v36 = vadd.f32 %v1439_v35, %v3347_v48  ;;  %v1503_v48 = vld [vmem:[#allocation14 + $0x18] sm:$0xff] }
 0x754   : > { %1521 = vmatpush.msra.mxu2 %v1503_v48 }
 0x755   : > { %v1444_v37 = vsel %vm863_vm0, %v1441_v36, 0.0 }
 0x756   : > { %1445 = vadd.xlane.f32.xlu0 %v1444_v37  ;;  %1522 = vmatpush.msra.mxu2 %v1502_v1  ;;  %v1562_v37 = vld [vmem:[#allocation7 + $0x30] sm:$0xff] }
 0x758   : > { %1523 = vmatpush.msra.mxu2 %v1501_v2 }
 0x75a   : > { %1524 = vmatpush.msra.mxu2 %v1500_v3 }
 0x7c9   : > { %v1446_v38 = vpop.xlane.xlu0 %1445 }
 0x7ca   : > { %v1447_v39 = vmul.f32 %v1446_v38, %v3332_v20  ;;  %v1561_v38 = vld [vmem:[#allocation7 + $0x28] sm:$0xff] }
 0x7cc   : > { %v1448_v40 = vsub.f32 %v1441_v36, %v1447_v39  ;;  %v1563_v36 = vld [vmem:[#allocation7 + $0x38] sm:$0xff]  ;;  %v1560_v39 = vld [vmem:[#allocation7 + $0x20] sm:$0xff] }
 0x7cd   : > { %1581 = vmatpush.msrb.mxu3 %v1563_v36 }
 0x7ce   : > { %v1449_v41 = vmul.f32 %v1448_v40, %v1448_v40 }
 0x7cf   : > { %1582 = vmatpush.msrb.mxu3 %v1562_v37 }
 0x7d0   : > { %v1450_v42 = vsel %vm863_vm0, %v1449_v41, 0.0 }
 0x7d1   : > { %1451 = vadd.xlane.f32.xlu1 %v1450_v42  ;;  %1583 = vmatpush.msrb.mxu3 %v1561_v38 }
 0x7d3   : > { %1584 = vmatpush.msrb.mxu3 %v1560_v39 }
 0x844   : > { %v1452_v49 = vpop.xlane.xlu1 %1451 }
 0x845   : > { %v1453_v50 = vmul.f32 %v1452_v49, %v3332_v20 }
 0x847   : > { %v1454_v51 = vadd.f32 1e-08, %v1453_v50  ;;  %v2637_v50 = vld [vmem:[%s3659_s16 + $0x1] ss:$0 sm:$0xff] }
 0x849   : > { %2659 = vrsqrt.f32 %v1454_v51  ;;  %vm1461_vm9 = vweird.f32 %v1454_v51 }
 0x84f   : > { %v2660_v52 = vpop.eup %2659 }
 0x850   : > { %v1456_v53 = vmul.f32 %v2660_v52, %v1454_v51  ;;  %vm1462_vm8 = vweird.f32 %v2660_v52 }
 0x851   : > { %vm1463_vm10 = vmor %vm1461_vm9, %vm1462_vm8 }
 0x852   : > { %v1457_v54 = vmul.f32 %v2660_v52, %v1456_v53  ;;  %v2638_v53 = vld [vmem:[%s3660_s24 + $0x1] ss:$0 sm:$0xff] }
 0x854   : > { %v1458_v55 = vmul.f32 0.5, %v1457_v54 }
 0x856   : > { %v1459_v56 = vsub.f32 1.5, %v1458_v55 }
 0x858   : > { %v1460_v58 = vmul.f32 %v2660_v52, %v1459_v56  ;;  %v2639_v56 = vld [vmem:[%s3596_s7 + $0x1] ss:$0 sm:$0xff] }
 0x85a   : > { %v1464_v60 = vsel %vm1463_vm10, %v2660_v52, %v1460_v58 }
 0x85b   : > { %v1465_v61 = vmul.f32 %v1464_v60, %v1448_v40 }
 0x85d   : > { %v1467_v63 = vmul.f32 %v2631_v59, %v1465_v61 }
 0x85f   : > { %v1469_v0 = vadd.f32 %v2632_v62, %v1467_v63 }
 0x861   : > { %2465 = vmatmul.msk.f32.vlgmr.msra.gmra.mxu3 %vm863_vm0, %v1469_v0 }
 0x8e4   : > { %v1496_v5 = vpop.f32.mrf.mxu3 }
 0x8e5   : > { %v1497_v6 = vadd.f32 %v2633_v4, %v1496_v5 }
 0x8e7   : > { %v1499_v7 = vmax.f32 %v1497_v6, 0.0 }
 0x8e9   : > { %2466 = vmatmul.msk.f32.vlgmr.msra.gmra.mxu2 %vm863_vm0, %v1499_v7 }
 0x96c   : > { %v1526_v18 = vpop.f32.mrf.mxu2 }
 0x96d   : > { %v1527_v19 = vadd.f32 %v2634_v17, %v1526_v18 }
 0x96f   : > { %v1529_v21 = vadd.f32 %v1527_v19, %v1469_v0 }
 0x971   : > { %v1530_v22 = vmul.f32 %v1529_v21, %v3326_v11 }
 0x973   : > { %2468 = vmatmul.msk.f32.vlgmr.msra.gmra.mxu0 %vm863_vm0, %v1530_v22  ;;  %2469 = vmatmul.msk.f32.vlgmr.msra.gmra.mxu1 %vm863_vm0, %v1530_v22  ;;  %v1533_v23 = vsel %vm863_vm0, %v1530_v22, 0.0 }
 0x974   : > { %1534 = vadd.xlane.f32.xlu2 %v1533_v23 }
 0x9e7   : > { %v1535_v24 = vpop.xlane.xlu2 %1534 }
 0x9e8   : > { %v1536_v25 = vmul.f32 %v1535_v24, %v3332_v20 }
 0x9ea   : > { %v1537_v26 = vsub.f32 %v1530_v22, %v1536_v25 }
 0x9ec   : > { %v1538_v27 = vmul.f32 %v1537_v26, %v1537_v26 }
 0x9ee   : > { %v1539_v29 = vsel %vm863_vm0, %v1538_v27, 0.0 }
 0x9ef   : > { %1540 = vadd.xlane.f32.xlu1 %v1539_v29 }
 0x9f0   : > { %v1643_v30 = vpop.f32.mrf.mxu1  ;;  %v1616_v34 = vpop.f32.mrf.mxu0 }
 0x9f1   : > { %v3445_v31 = vadd.f32 %v2636_v28, %v1643_v30  ;;  %v1617_v35 = vadd.f32 %v2635_v32, %v1616_v34 }
 0x9f3   : > { %1654 = vrot.lane.b32.xlu2 %v3445_v31, %s3014_s29 }
 0xa08   : > { %1650 = vrot.lane.b32.xlu1 %v1617_v35, %s3014_s29 }
 0xa4d   : > { %v1655_v62 = vpop.permute.xlu2 %1654 }
 0xa62   : > { %v1541_v40 = vpop.xlane.xlu1 %1540 }
 0xa63   : > { %v1542_v41 = vmul.f32 %v1541_v40, %v3332_v20  ;;  %v2078_v40 = vld [vmem:[#allocation11 + $0x38] sm:$0xff] }
 0xa65   : > { %v1543_v42 = vadd.f32 1e-08, %v1542_v41  ;;  %v2077_v41 = vld [vmem:[#allocation11 + $0x30] sm:$0xff] }
 0xa67   : > { %2661 = vrsqrt.f32 %v1543_v42  ;;  %vm1550_vm12 = vweird.f32 %v1543_v42 }
 0xa6d   : > { %v2662_v43 = vpop.eup %2661 }
 0xa6e   : > { %v1545_v45 = vmul.f32 %v2662_v43, %v1543_v42  ;;  %vm1551_vm11 = vweird.f32 %v2662_v43 }
 0xa6f   : > { %vm1552_vm13 = vmor %vm1550_vm12, %vm1551_vm11 }
 0xa70   : > { %v1546_v46 = vmul.f32 %v2662_v43, %v1545_v45  ;;  %v2076_v45 = vld [vmem:[#allocation11 + $0x28] sm:$0xff] }
 0xa72   : > { %v1547_v47 = vmul.f32 0.5, %v1546_v46 }
 0xa74   : > { %v1548_v48 = vsub.f32 1.5, %v1547_v47 }
 0xa76   : > { %v1549_v49 = vmul.f32 %v2662_v43, %v1548_v48 }
 0xa78   : > { %v1553_v51 = vsel %vm1552_vm13, %v2662_v43, %v1549_v49 }
 0xa79   : > { %v1554_v52 = vmul.f32 %v1553_v51, %v1537_v26 }
 0xa7a   : > { %v1651_v60 = vpop.permute.xlu1 %1650 }
 0xa7b   : > { %v1556_v54 = vmul.f32 %v2637_v50, %v1554_v52  ;;  %v2613_v61 = vpack.i.bf16 %v1651_v60, %v1617_v35 }
 0xa7d   : > { %v3460_v55 = vadd.f32 %v2638_v53, %v1556_v54 }
 0xa7f   : > { %2467 = vmatmul.msk.f32.vlgmr.msrb.gmra.mxu3 %vm863_vm0, %v3460_v55 }
 0xb02   : > { %v1586_v58 = vpop.f32.mrf.mxu3 }
 0xb03   : > { %v1587_v59 = vadd.f32 %v2639_v56, %v1586_v58 }
 0xb05   : > { %1647 = vrot.lane.b32.xlu1 %v1587_v59, %s3014_s29  ;;  %s843_s29 = scalar_lea.vmem [#allocation16], %s2450_s18 }
 0xb3a   : > { %2614 = vxpose.xlu1.b32.start.end [1/1] (short) (narrow) %v2613_v61, 16 }
 0xb4a   : > { %1819 = vxpose.xlu1.b32.start.end [1/1] (short) (narrow) %v1655_v62, 16 }
 0xb77   : > { %v1648_v63 = vpop.permute.xlu1 %1647 }
 0xbde   : > { %v2615_v0 = vpop.trf.xlu1 }
 0xbdf   : > { %v2616_v4 = vunpack.i.l.bf16 %v2615_v0  ;;  %v2619_v5 = vunpack.i.h.bf16 %v2615_v0 }
 0xbe6   : > { %v2620_v1 = vpop.trf.xlu1 }
 0xbe7   : > { %v2624_v2 = vunpack.i.h.bf16 %v2620_v1  ;;  %v2621_v3 = vunpack.i.l.bf16 %v2620_v1 }
 0xbe9   : > { %1737 = vmatpush.msrb.mxu2 %v2621_v3  ;;  %1759 = vmatpush.msra.mxu3 %v2624_v2 }
 0xbeb   : > { %1738 = vmatpush.msrb.mxu2 %v2616_v4  ;;  %1760 = vmatpush.msra.mxu3 %v2619_v5 }
 0xbec   : > { %2470 = vmatmul.msk.f32.vlgmr.msrb.gmra.mxu2 %vm1056_vm5, %v1587_v59  ;;  %2471 = vmatmul.msk.f32.vlgmr.msra.gmra.mxu3 %vm1056_vm5, %v1648_v63 }
 0xbed   : > { %2096 = vmatpush.msra.mxu2 %v2078_v40 }
 0xbee   : > { %v1835_v29 = vpop.trf.xlu1 }
 0xbef   : > { %2097 = vmatpush.msra.mxu2 %v2077_v41 }
 0xbf1   : > { %2098 = vmatpush.msra.mxu2 %v2076_v45  ;;  %v2136_v45 = vld [vmem:[#allocation13 + $0x30] sm:$0xff] }
 0xbf6   : > { %v1836_v30 = vpop.trf.xlu1 }
 0xc6f   : > { %v1740_v6 = vpop.f32.mrf.mxu2  ;;  %v1762_v9 = vpop.f32.mrf.mxu3 }
 0xc70   : > { %v1741_v7 = vadd.f32 %v1740_v6, %v3357_v57  ;;  %v1763_v10 = vadd.f32 %v1762_v9, %v3357_v57 }
 0xc72   : > { %v1765_v8 = vsel %vm1101_vm6, %v1741_v7, -inf  ;;  %v1768_v12 = vsel %vm1101_vm6, %v1763_v10, -inf }
 0xc73   : > { %1766 = vmax.xlane.f32.xlu0 %v1765_v8 }
 0xc7b   : > { %1769 = vmax.xlane.f32.xlu0 %v1768_v12 }
 0xce6   : > { %v1767_v13 = vpop.xlane.xlu0 %1766 }
 0xce7   : > { %v1771_v14 = vsub.f32 %v1741_v7, %v1767_v13 }
 0xce9   : > { %v1773_v15 = vmul.f32 1.442695, %v1771_v14 }
 0xceb   : > { %2663 = vpow2.f32 %v1773_v15 }
 0xcee   : > { %v1770_v16 = vpop.xlane.xlu0 %1769 }
 0xcef   : > { %v1772_v17 = vsub.f32 %v1763_v10, %v1770_v16 }
 0xcf1   : > { %v2664_v18 = vpop.eup %2663  ;;  %v1775_v19 = vmul.f32 1.442695, %v1772_v17 }
 0xcf2   : > { %v1777_v21 = vsel %vm1101_vm6, %v2664_v18, 0.0 }
 0xcf3   : > { %2665 = vpow2.f32 %v1775_v19  ;;  %1778 = vadd.xlane.f32.xlu0 %v1777_v21 }
 0xcf9   : > { %v2666_v22 = vpop.eup %2665 }
 0xcfa   : > { %v1780_v23 = vsel %vm1101_vm6, %v2666_v22, 0.0 }
 0xcfb   : > { %1781 = vadd.xlane.f32.xlu0 %v1780_v23 }
 0xd24   : > { %1787 = vxpose.xlu0.b32.start.end [1/1] (short) (narrow) %v3445_v31, 16 }
 0xd66   : > { %v1779_v57 = vpop.xlane.xlu0 %1778 }
 0xd67   : > { %2667 = vrcp.f32 %v1779_v57 }
 0xd6d   : > { %v2668_v24 = vpop.eup %2667 }
 0xd6e   : > { %v1785_v25 = vmul.f32 %v2668_v24, %v2664_v18  ;;  %v1782_v26 = vpop.xlane.xlu0 %1781 }
 0xd6f   : > { %2669 = vrcp.f32 %v1782_v26 }
 0xd70   : > { %2472 = vmatpush.xpose.msk.msrb.mxu0 %vm1101_vm6, %v1785_v25 }
 0xd75   : > { %v2670_v27 = vpop.eup %2669 }
 0xd76   : > { %v1786_v28 = vmul.f32 %v2670_v27, %v2666_v22 }
 0xd78   : > { %2475 = vmatpush.xpose.msk.msrb.mxu1 %vm1101_vm6, %v1786_v28 }
 0xd7b   : > { %2476 = vmatmul.msk.f32.vlgmr.msrb.gmra.mxu1 %vm1101_vm6, %v1835_v29 }
 0xd83   : > { %2477 = vmatmul.msk.f32.gmra.mxu1 %vm1101_vm6, %v1836_v30 }
 0xdc8   : > { %v1803_v32 = vpop.trf.xlu0 }
 0xdc9   : > { %2473 = vmatmul.msk.f32.vlgmr.msrb.gmra.mxu0 %vm1101_vm6, %v1803_v32  ;;  %v2075_v32 = vld [vmem:[#allocation11 + $0x20] sm:$0xff] }
 0xdca   : > { %2099 = vmatpush.msra.mxu2 %v2075_v32 }
 0xdd0   : > { %v1804_v31 = vpop.trf.xlu0 }
 0xdd1   : > { %2474 = vmatmul.msk.f32.gmra.mxu0 %vm1101_vm6, %v1804_v31 }
 0xdf8   : > { %v1909_v34 = vpop.f32.mrf.mxu1 }
 0xdf9   : > { %1947 = vxpose.xlu1.b32.start [1/2] (short) (narrow) %v1909_v34, 8  ;;  %v2640_v34 = vld [vmem:[%s3602_s13 + $0x1] ss:$0 sm:$0xff] }
 0xe00   : > { %v1912_v35 = vpop.f32.mrf.mxu1 }
 0xe01   : > { %1948 = vxpose.xlu1.b32.end [2/2] (short) (narrow) %v1912_v35, 8 }
 0xe46   : > { %v1877_v36 = vpop.f32.mrf.mxu0 }
 0xe47   : > { %1915 = vxpose.xlu2.b32.start [1/2] (short) (narrow) %v1877_v36, 8 }
 0xe4e   : > { %v1880_v37 = vpop.f32.mrf.mxu0 }
 0xe4f   : > { %1916 = vxpose.xlu2.b32.end [2/2] (short) (narrow) %v1880_v37, 8 }
 0xe9d   : > { %v1963_v38 = vpop.trf.xlu1 }
 0xe9e   : > { %v1989_v39 = vrot.slane %v1963_v38, 4  ;;  %v1994_v43 = vperm.slane %v1963_v38, %v3375_v33 }
 0xea0   : > { %v1990_v42 = vsel %vm1317_vm7, 0.0, %v1989_v39  ;;  %v1999_v47 = vrot.slane %v1994_v43, 4 }
 0xea1   : > { %v1998_v46 = vperm.slane %v1990_v42, %v3375_v33 }
 0xea3   : > { %v2011_v51 = vrot.slane %v1998_v46, 4 }
 0xee0   : > { %v1931_v48 = vpop.trf.xlu2 }
 0xee1   : > { %v1979_v49 = vrot.slane %v1931_v48, 4  ;;  %v1984_v50 = vperm.slane %v1931_v48, %v3375_v33 }
 0xee3   : > { %v1980_v52 = vsel %vm1317_vm7, 0.0, %v1979_v49  ;;  %v2001_v53 = vrot.slane %v1984_v50, 4  ;;  %v2000_v54 = vsel %vm1317_vm7, %v1999_v47, %v1984_v50  ;;  %v2134_v47 = vld [vmem:[#allocation13 + $0x20] sm:$0xff] }
 0xee4   : > { %v1988_v56 = vperm.slane %v1980_v52, %v3375_v33  ;;  %v2006_v58 = vperm.slane %v2000_v54, %v3380_v44 }
 0xee5   : > { %v2002_v59 = vsel %vm1317_vm7, %v1994_v43, %v2001_v53  ;;  %v2137_v43 = vld [vmem:[#allocation13 + $0x38] sm:$0xff] }
 0xee6   : > { %v2013_v60 = vrot.slane %v1988_v56, 4  ;;  %v2010_v61 = vperm.slane %v2002_v59, %v3380_v44  ;;  %v2012_v62 = vsel %vm1317_vm7, %v2011_v51, %v1988_v56  ;;  %v2023_v1 = vrot.slane %v2006_v58, 4  ;;  %2155 = vmatpush.msrb.mxu3 %v2137_v43  ;;  %v2641_v59 = vld [vmem:[%s3603_s14 + $0x1] ss:$0 sm:$0xff] }
 0xee7   : > { %v2018_v63 = vperm.slane %v2012_v62, %v3380_v44  ;;  %v2642_v62 = vld [vmem:[%s3604_s15 + $0x1] ss:$0 sm:$0xff] }
 0xee8   : > { %v2014_v0 = vsel %vm1317_vm7, %v1998_v46, %v2013_v60  ;;  %v2025_v2 = vrot.slane %v2010_v61, 4  ;;  %v2024_v8 = vsel %vm1317_vm7, 0.0, %v2023_v1  ;;  %2156 = vmatpush.msrb.mxu3 %v2136_v45  ;;  %v2135_v46 = vld [vmem:[#allocation13 + $0x28] sm:$0xff]  ;;  %v2167_v1 = vld [vmem:[#allocation14 + $0x30] sm:$0xff] }
 0xee9   : > { %v2022_v3 = vperm.slane %v2014_v0, %v3380_v44  ;;  %v2027_v5 = vrot.slane %v2018_v63, 4 }
 0xeea   : > { %v2026_v4 = vsel %vm1317_vm7, 0.0, %v2025_v2  ;;  %v2031_v10 = vsel %vm1317_vm7, %v2025_v2, %v2006_v58  ;;  %2157 = vmatpush.msrb.mxu3 %v2135_v46  ;;  %v2166_v2 = vld [vmem:[#allocation14 + $0x28] sm:$0xff] }
 0xeeb   : > { %v2029_v6 = vrot.slane %v2022_v3, 4  ;;  %v2036_v7 = vrot.slane %v2026_v4, 4  ;;  %v2028_v15 = vsel %vm1317_vm7, 0.0, %v2027_v5  ;;  %v2035_v16 = vperm.slane %v2031_v10, %v3375_v33  ;;  %v2165_v3 = vld [vmem:[#allocation14 + $0x20] sm:$0xff]  ;;  %v2643_v4 = vld [vmem:[%s3661_s20 + $0x1] ss:$0 sm:$0xff] }
 0xeec   : > { %2158 = vmatpush.msrb.mxu3 %v2134_v47 }
 0xeed   : > { %v2030_v9 = vsel %vm1317_vm7, 0.0, %v2029_v6  ;;  %v2037_v12 = vsel %vm1317_vm7, %v2036_v7, %v2024_v8  ;;  %v2042_v17 = vsel %vm1317_vm7, %v2029_v6, %v2018_v63  ;;  %v2644_v8 = vld [vmem:[%s3662_s2 + $0x1] ss:$0 sm:$0xff] }
 0xeee   : > { %v2047_v13 = vrot.slane %v2030_v9, 4  ;;  %v2041_v14 = vperm.slane %v2037_v12, %v3375_v33  ;;  %v2046_v23 = vperm.slane %v2042_v17, %v3375_v33 }
 0xef0   : > { %v2048_v18 = vsel %vm1317_vm7, %v2047_v13, %v2028_v15  ;;  %v2053_v19 = vrot.slane %v2041_v14, 4 }
 0xef1   : > { %v2052_v21 = vperm.slane %v2048_v18, %v3375_v33 }
 0xef2   : > { %v2054_v22 = vsel %vm1317_vm7, %v2053_v19, %v2035_v16 }
 0xef3   : > { %v2058_v57 = vperm.slane %v2054_v22, %v3380_v44  ;;  %v2059_v24 = vrot.slane %v2052_v21, 4 }
 0xef5   : > { %v2060_v25 = vsel %vm1317_vm7, %v2059_v24, %v2046_v23  ;;  %v2067_v26 = vrot.slane %v2058_v57, 4 }
 0xef6   : > { %v2064_v27 = vperm.slane %v2060_v25, %v3380_v44 }
 0xef8   : > { %v2068_v28 = vsel %vm1317_vm7, %v2064_v27, %v2067_v26  ;;  %v2065_v29 = vrot.slane %v2064_v27, 4 }
 0xef9   : > { %2070 = vrot.lane.b32.xlu0 %v2068_v28, %s3017_s22  ;;  %v2645_v28 = vld [vmem:[%s3663_s1] ss:$0 sm:$0xff]  ;;  %s2264_s1 = sshll.u32 %s2260_s17, 4  ;;  %s2265_s1 = int_to_ptr.hbm [resolvable:$true] %s2264_s1 }
 0xefa   : > { %v2066_v30 = vsel %vm1317_vm7, %v2065_v29, %v2058_v57  ;;  %s2929_s22 = sshra.s32 %s2265_s1, 4  ;;  %s2930_s22 = int_to_ptr.hbm [resolvable:$true] %s2929_s22 }
 0xefb   : > { %s2931_s25 = scalar_lea.hbm %s2930_s22, 2  ;;  %p2936_p7 = scmp.lt.s32.totalorder %s2930_s22, %s3665_s10 }
 0xefc   : > { %p2932_p1 = scmp.ne.s32.totalorder %s2930_s22, %s2931_s25  ;;  %p2937_p8 = scmp.lt.s32.totalorder %s2935_s19, %s2931_s25 }
 0xefe   : > { %p2933_p5 = pnand %p2932_p1, %p3251_p0  ;;  %p2938_p9 = por %p2937_p8, %p2936_p7 }
 0xf00   : > { %p2934_p13 = pneg %p2933_p5 }
 0xf02   : > { %p2939_p10 = pnand %p2938_p9, %p2934_p13 }
 0xf6b   : > { %v2071_v31 = vpop.permute.xlu0 %2070 }
 0xf6c   : > { %v2073_v33 = vsel %vm1056_vm5, %v2066_v30, %v2071_v31  ;;  %v2646_v30 = vld [vmem:[%s3664_s26] ss:$0 sm:$0xff]  ;;  %vm2244_vm5 = vcmask 1041409  }
 0xf6d   : > { %2478 = vmatmul.msk.f32.vlgmr.msra.gmra.mxu2 %vm863_vm0, %v2073_v33  ;;  %v2229_v31 = vld [vmem:[%s3296_s21 + $0x8] sm:$0xff]  ;;  %v2228_v33 = vld [vmem:[%s3296_s21] sm:$0xff]  ;;  %s2262_s21 = sshll.u32 %s843_s29, 4  ;;  %s2263_s21 = int_to_ptr.vmem [resolvable:$true] %s2262_s21 }
 0xff0   : > { %v2101_v35 = vpop.f32.mrf.mxu2 }
 0xff1   : > { %v2102_v44 = vadd.f32 %v2640_v34, %v2101_v35 }
 0xff3   : > { %v2104_v36 = vadd.f32 %v2102_v44, %v3460_v55  ;;  %v2168_v55 = vld [vmem:[#allocation14 + $0x38] sm:$0xff] }
 0xff4   : > { %2186 = vmatpush.msrb.mxu2 %v2168_v55 }
 0xff5   : > { %v2107_v37 = vsel %vm863_vm0, %v2104_v36, 0.0 }
 0xff6   : > { %2108 = vadd.xlane.f32.xlu1 %v2107_v37  ;;  %2187 = vmatpush.msrb.mxu2 %v2167_v1 }
 0xff8   : > { %2188 = vmatpush.msrb.mxu2 %v2166_v2 }
 0xffa   : > { %2189 = vmatpush.msrb.mxu2 %v2165_v3 }
0x1069   : > { %v2109_v38 = vpop.xlane.xlu1 %2108 }
0x106a   : > { %v2110_v39 = vmul.f32 %v2109_v38, %v3332_v20  ;;  %v2240_v38 = vlaneseq }
0x106c   : > { %v2111_v40 = vsub.f32 %v2104_v36, %v2110_v39  ;;  %v2241_v39 = vand.u32 127, %v2240_v38 }
0x106e   : > { %v2112_v41 = vmul.f32 %v2111_v40, %v2111_v40 }
0x1070   : > { %v2113_v42 = vsel %vm863_vm0, %v2112_v41, 0.0 }
0x1071   : > { %2114 = vadd.xlane.f32.xlu2 %v2113_v42 }
0x10e4   : > { %v2115_v48 = vpop.xlane.xlu2 %2114 }
0x10e5   : > { %v2116_v49 = vmul.f32 %v2115_v48, %v3332_v20 }
0x10e7   : > { %v2117_v50 = vadd.f32 1e-08, %v2116_v49 }
0x10e9   : > { %2671 = vrsqrt.f32 %v2117_v50  ;;  %vm2124_vm15 = vweird.f32 %v2117_v50 }
0x10ef   : > { %v2672_v51 = vpop.eup %2671 }
0x10f0   : > { %v2119_v52 = vmul.f32 %v2672_v51, %v2117_v50  ;;  %vm2125_vm14 = vweird.f32 %v2672_v51 }
0x10f1   : > { %vm2126_vm1 = vmor %vm2124_vm15, %vm2125_vm14 }
0x10f2   : > { %v2120_v53 = vmul.f32 %v2672_v51, %v2119_v52 }
0x10f4   : > { %v2121_v54 = vmul.f32 0.5, %v2120_v53 }
0x10f6   : > { %v2122_v56 = vsub.f32 1.5, %v2121_v54 }
0x10f8   : > { %v2123_v58 = vmul.f32 %v2672_v51, %v2122_v56 }
0x10fa   : > { %v2127_v60 = vsel %vm2126_vm1, %v2672_v51, %v2123_v58 }
0x10fb   : > { %v2128_v61 = vmul.f32 %v2127_v60, %v2111_v40 }
0x10fd   : > { %v2130_v63 = vmul.f32 %v2641_v59, %v2128_v61 }
0x10ff   : > { %v2132_v0 = vadd.f32 %v2642_v62, %v2130_v63 }
0x1101   : > { %2479 = vmatmul.msk.f32.vlgmr.msrb.gmra.mxu3 %vm863_vm0, %v2132_v0 }
0x1184   : > { %v2160_v5 = vpop.f32.mrf.mxu3 }
0x1185   : > { %v2161_v6 = vadd.f32 %v2643_v4, %v2160_v5 }
0x1187   : > { %v2163_v7 = vmax.f32 %v2161_v6, 0.0 }
0x1189   : > { %2480 = vmatmul.msk.f32.vlgmr.msrb.gmra.mxu2 %vm863_vm0, %v2163_v7 }
0x120c   : > { %v2191_v9 = vpop.f32.mrf.mxu2 }
0x120d   : > { %v2192_v10 = vadd.f32 %v2644_v8, %v2191_v9 }
0x120f   : > { %v2194_v12 = vadd.f32 %v2192_v10, %v2132_v0 }
0x1211   : > { %v2195_v13 = vmul.f32 %v2194_v12, %v3326_v11 }
0x1213   : > { %v2198_v14 = vsel %vm863_vm0, %v2195_v13, 0.0 }
0x1214   : > { %2199 = vadd.xlane.f32.xlu1 %v2198_v14 }
0x1287   : > { %v2200_v15 = vpop.xlane.xlu1 %2199 }
0x1288   : > { %v2201_v16 = vmul.f32 %v2200_v15, %v3332_v20 }
0x128a   : > { %v2202_v17 = vsub.f32 %v2195_v13, %v2201_v16 }
0x128c   : > { %v2203_v18 = vmul.f32 %v2202_v17, %v2202_v17 }
0x128e   : > { %v2204_v19 = vsel %vm863_vm0, %v2203_v18, 0.0 }
0x128f   : > { %2205 = vadd.xlane.f32.xlu1 %v2204_v19 }
0x1302   : > { %v2206_v21 = vpop.xlane.xlu1 %2205 }
0x1303   : > { %v2207_v22 = vmul.f32 %v2206_v21, %v3332_v20 }
0x1305   : > { %v2208_v23 = vadd.f32 1e-08, %v2207_v22 }
0x1307   : > { %2673 = vrsqrt.f32 %v2208_v23  ;;  %vm2215_vm3 = vweird.f32 %v2208_v23 }
0x130d   : > { %v2674_v57 = vpop.eup %2673 }
0x130e   : > { %v2210_v11 = vmul.f32 %v2674_v57, %v2208_v23  ;;  %vm2216_vm2 = vweird.f32 %v2674_v57 }
0x130f   : > { %vm2217_vm4 = vmor %vm2215_vm3, %vm2216_vm2 }
0x1310   : > { %v2211_v24 = vmul.f32 %v2674_v57, %v2210_v11 }
0x1312   : > { %v2212_v25 = vmul.f32 0.5, %v2211_v24 }
0x1314   : > { %v2213_v26 = vsub.f32 1.5, %v2212_v25 }
0x1316   : > { %v2214_v27 = vmul.f32 %v2674_v57, %v2213_v26 }
0x1318   : > { %v2218_v20 = vsel %vm2217_vm4, %v2674_v57, %v2214_v27 }
0x1319   : > { %v2219_v29 = vmul.f32 %v2218_v20, %v2202_v17 }
0x131b   : > { %v2223_v32 = vmul.f32 %v2645_v28, %v2219_v29 }
0x131d   : > { %v2227_v34 = vadd.f32 %v2646_v30, %v2223_v32 }
0x131f   : > { %v2231_v35 = vmul.f32 %v2229_v31, %v2227_v34  ;;  %v2230_v44 = vmul.f32 %v2228_v33, %v2227_v34 }
0x1321   : > { %v2235_v36 = vsel %vm863_vm0, %v2231_v35, 0.0  ;;  %v2232_v37 = vsel %vm863_vm0, %v2230_v44, 0.0  ;;  %vm2247_vm0 = vcmask 58368  }
0x1322   : > { %2236 = vadd.xlane.f32.xlu0 %v2235_v36  ;;  %2233 = vadd.xlane.f32.xlu1 %v2232_v37 }
0x1395   : > { %v2237_v40 = vpop.xlane.xlu0 %2236  ;;  %v2234_v41 = vpop.xlane.xlu1 %2233 }
0x1396   : > { %v2243_v42 = vperm.slane %v2237_v40, %v2241_v39  ;;  %v2242_v43 = vperm.slane %v2234_v41, %v2241_v39 }
0x1398   : > { %v2245_v45 = vsel %vm2244_vm5, %v2243_v42, %v2242_v43 }
0x1399   : > { %2248 = vst.msk [vmem:[%s843_s29] sm:$0x3] %vm2247_vm0, %v2245_v45 }
0x139a   : > { %2942 = shalt.err (!%p2939_p10)
}
0x139b   : > { %2516 = dma.vmem_to_hbm [thread:$0]  (%p3251_p0), %s2263_s21, 32, %s2265_s1, %s2250_s5  }
0x139c PF: > { %s2276_s4 = sand.u32 1, %s2989_s3   ;;  %p3666_p11 = scmp.ge.s32.totalorder %s3001_s30, 2 }
0x139d   : > { %s2277_s17 = scalar_lea.sflag [#allocation4], %s2276_s4 }
0x139e   : > { %p2545_p12 = pnand %p3666_p11, %p3257_p6 }
0x13a0   : > { %p2546_p2 = pneg %p2545_p12 }
0x13a2   : > { %2984 = dma.done.wait (%p2546_p2), %s2277_s17, 32  }
0x13a3   : > { %2986 = vsyncadd (%p2546_p2), %s2277_s17, 4294967264  ;;  %s3667_s29 = sld [smem:[#allocation24_spill]]  ;;  %p39_p4 = scmp.ge.s32.totalorder %s3227_s27, 4  }
0x13a4   : > { %s3668_s22 = sld [smem:[#allocation25_spill]]  ;;  %s3669_s3 = smov %s2993_s28 }
0x13a5   : > { %s3672_s30 = smov %s3227_s27 }
0x13a6   :  { %41 = sbr.rel (!%p39_p4) target bundleno = 27 (0x1b), region = 194 }
0x13a9   : > { %s3670_s28 = smov %s3667_s29 }
0x13aa   : > { %s3671_s29 = smov %s3668_s22 }
0x13ab   :  { %2283 = vsyncpa [#allocation3], 1 }
0x13ac   :  { %2285 = vsyncpa [#allocation3 + $0x1], 1 }
0x13ad   :  { %2286 = vsyncpa [#allocation6], 1 }
0x13ae   :  { %2288 = vsyncpa [#allocation6 + $0x1], 1 }
0x13af   :  { %2289 = vsyncpa [#allocation9], 1 }
0x13b0   :  { %2290 = vsyncpa [#allocation12], 1 }
0x13b1   :  { %2291 = vsyncpa [#allocation15], 1 }
0x13b2   :  { %2292 = vsyncpa [#allocation4], 1 }
0x13b3   :  { %2294 = vsyncpa [#allocation4 + $0x1], 1 }

</bundles_post_ra>
